<compile_context>
chip_gen: v6e
topology: v6e:2x2x1
jax: 0.10.0
libtpu: 0.0.40
codegen_flags: <defaults>
</compile_context>

<pallas_src>
import math
from functools import partial

import jax
import jax.numpy as jnp
from jax.experimental import pallas as pl
from jax.experimental.pallas import tpu as pltpu


def _cross_attn_layer_kernel(tgt_ref, mem_ref, bias_ref, wd_ref, wf_ref,
                             vd_ref, b1_ref, out_ref, *, nhead, eps=1e-5):
    # tgt_ref:  (1, T, D)   one batch element (grid axis 0 = batch)
    # mem_ref:  (1, S, D)
    # bias_ref: (1, 1, S)   additive key-padding bias (-1e9 on masked keys)
    # wd_ref:   (D, 8D+F)   packed weights contracting over D (see pack_params)
    # wf_ref:   (F, D)      linear2 weight, transposed
    # vd_ref:   (15, D)     packed biases + LayerNorm params
    # b1_ref:   (1, F)      linear1 bias
    T, D = tgt_ref.shape[1], tgt_ref.shape[2]
    F = b1_ref.shape[1]
    Dh = D // nhead
    scale = 1.0 / math.sqrt(Dh)

    # -- packed-slab layout constants (must match pack_params) ---------------
    C_SA_IN, C_CA_IN = 0, 3 * D            # in_proj weights (q|k|v), transposed
    C_SA_OUT, C_CA_OUT = 6 * D, 7 * D      # out_proj weights, transposed
    C_W1 = 8 * D                           # linear1 weight, transposed
    R_SA_B, R_CA_B, R_B2 = 0, 4, 8         # rows: q/k/v/out biases, linear2 bias
    R_G1, R_BE1, R_G2, R_BE2, R_G3, R_BE3 = 9, 10, 11, 12, 13, 14

    x = tgt_ref[0]                         # (T, D)
    mem = mem_ref[0]                       # (S, D)
    kp_bias = bias_ref[0]                  # (1, S)
    wd = wd_ref[...]
    vd = vd_ref[...]

    def layer_norm(h, r_g, r_b):
        mu = jnp.mean(h, axis=-1, keepdims=True)
        c = h - mu
        var = jnp.mean(c * c, axis=-1, keepdims=True)
        return c * jax.lax.rsqrt(var + eps) * vd[r_g:r_g + 1, :] + vd[r_b:r_b + 1, :]

    def mha(q_in, kv_in, c_in, c_out, r_b, attn_bias, fuse_qkv):
        if fuse_qkv:
            # self-attention: one fused (T,D)@(D,3D) matmul for Q,K,V
            qkv = jnp.dot(q_in, wd[:, c_in:c_in + 3 * D],
                          preferred_element_type=jnp.float32)
            q = qkv[:, 0:D] + vd[r_b:r_b + 1, :]
            k = qkv[:, D:2 * D] + vd[r_b + 1:r_b + 2, :]
            v = qkv[:, 2 * D:3 * D] + vd[r_b + 2:r_b + 3, :]
        else:
            # cross-attention: Q from q_in, fused K|V from kv_in
            q = jnp.dot(q_in, wd[:, c_in:c_in + D],
                        preferred_element_type=jnp.float32) + vd[r_b:r_b + 1, :]
            kv = jnp.dot(kv_in, wd[:, c_in + D:c_in + 3 * D],
                         preferred_element_type=jnp.float32)
            k = kv[:, 0:D] + vd[r_b + 1:r_b + 2, :]
            v = kv[:, D:2 * D] + vd[r_b + 2:r_b + 3, :]

        heads = []
        for h in range(nhead):             # static unroll; nhead is tiny
            sl = slice(h * Dh, (h + 1) * Dh)
            s = jnp.einsum('qd,kd->qk', q[:, sl], k[:, sl],
                           preferred_element_type=jnp.float32) * scale
            if attn_bias is not None:
                s = s + attn_bias          # (1, S) broadcast over query rows
            m = jnp.max(s, axis=-1, keepdims=True)
            p = jnp.exp(s - m)
            p = p / jnp.sum(p, axis=-1, keepdims=True)
            heads.append(jnp.dot(p, v[:, sl], preferred_element_type=jnp.float32))
        o = jnp.concatenate(heads, axis=-1)                       # (T, D)
        return jnp.dot(o, wd[:, c_out:c_out + D],
                       preferred_element_type=jnp.float32) + vd[r_b + 3:r_b + 4, :]

    # --- self-attention + residual + norm1  (dropout1 = identity) -----------
    x = layer_norm(x + mha(x, x, C_SA_IN, C_SA_OUT, R_SA_B, None, True),
                   R_G1, R_BE1)
    # --- cross-attention (key_padding_mask) + residual + norm2 --------------
    x = layer_norm(x + mha(x, mem, C_CA_IN, C_CA_OUT, R_CA_B, kp_bias, False),
                   R_G2, R_BE2)
    # --- feed-forward (relu) + residual + norm3  (dropout* = identity) ------
    h1 = jnp.maximum(
        jnp.dot(x, wd[:, C_W1:C_W1 + F], preferred_element_type=jnp.float32)
        + b1_ref[...], 0.0)
    ff = jnp.dot(h1, wf_ref[...], preferred_element_type=jnp.float32) \
        + vd[R_B2:R_B2 + 1, :]
    x = layer_norm(x + ff, R_G3, R_BE3)

    out_ref[0] = x.astype(out_ref.dtype)


def pack_params(p):
    """One-time (model-init) packing of layer params into DMA/MXU-friendly slabs."""
    D = p["sa_out_w"].shape[0]
    F = p["w1"].shape[0]
    f32 = jnp.float32
    # All weights that contract over D, transposed and packed along lanes:
    #   [ self in_proj^T | cross in_proj^T | self out^T | cross out^T | W1^T ]
    W_d = jnp.concatenate([
        p["sa_in_w"].T, p["ca_in_w"].T,
        p["sa_out_w"].T, p["ca_out_w"].T,
        p["w1"].T,
    ], axis=1).astype(f32)                                   # (D, 8D + F)
    W_f = p["w2"].T.astype(f32)                              # (F, D)
    # All (D,)-shaped vectors packed along sublanes (15 rows):
    V_d = jnp.concatenate([
        p["sa_in_b"].reshape(3, D), p["sa_out_b"].reshape(1, D),
        p["ca_in_b"].reshape(3, D), p["ca_out_b"].reshape(1, D),
        p["b2"].reshape(1, D),
        p["g1"].reshape(1, D), p["be1"].reshape(1, D),
        p["g2"].reshape(1, D), p["be2"].reshape(1, D),
        p["g3"].reshape(1, D), p["be3"].reshape(1, D),
    ], axis=0).astype(f32)                                   # (15, D)
    b1 = p["b1"].reshape(1, F).astype(f32)                   # (1, F)
    return W_d, W_f, V_d, b1


def cross_attention_layer(tgt, memory, key_padding_mask, packed, *, nhead):
    """tgt: (B,T,D), memory: (B,S,D), key_padding_mask: (B,S) bool (True=ignore) or None."""
    W_d, W_f, V_d, b1 = packed
    B, T, D = tgt.shape
    S = memory.shape[1]
    F = b1.shape[1]
    assert D % nhead == 0
    assert W_d.shape == (D, 8 * D + F) and W_f.shape == (F, D) and V_d.shape == (15, D)

    if key_padding_mask is None:
        attn_bias = jnp.zeros((B, 1, S), jnp.float32)
    else:
        attn_bias = jnp.where(key_padding_mask, -1e9, 0.0).astype(jnp.float32) \
                       .reshape(B, 1, S)

    kernel = partial(_cross_attn_layer_kernel, nhead=nhead)
    return pl.pallas_call(
        kernel,
        out_shape=jax.ShapeDtypeStruct((B, T, D), jnp.float32),
        grid=(B,),
        in_specs=[
            pl.BlockSpec((1, T, D), lambda b: (b, 0, 0)),        # tgt (per-batch)
            pl.BlockSpec((1, S, D), lambda b: (b, 0, 0)),        # memory
            pl.BlockSpec((1, 1, S), lambda b: (b, 0, 0)),        # additive key bias
            pl.BlockSpec((D, 8 * D + F), lambda b: (0, 0)),      # packed D-contraction weights
            pl.BlockSpec((F, D), lambda b: (0, 0)),              # linear2 weight^T
            pl.BlockSpec((15, D), lambda b: (0, 0)),             # packed biases + LN params
            pl.BlockSpec((1, F), lambda b: (0, 0)),              # linear1 bias
        ],
        out_specs=pl.BlockSpec((1, T, D), lambda b: (b, 0, 0)),
        compiler_params=pltpu.CompilerParams(
            dimension_semantics=("parallel",)),                  # megacore over batch (v7x)
    )(tgt.astype(jnp.float32), memory.astype(jnp.float32), attn_bias,
      W_d, W_f, V_d, b1)


def _reference(tgt, memory, key_padding_mask, p, nhead):
    """Pure-JAX reference matching torch eval-mode forward."""
    eps = 1e-5

    def ln(x, g, b):
        mu = x.mean(-1, keepdims=True)
        var = ((x - mu) ** 2).mean(-1, keepdims=True)
        return (x - mu) / jnp.sqrt(var + eps) * g + b

    def mha(q_in, kv_in, in_w, in_b, out_w, out_b, kpm):
        B, Tq, D = q_in.shape
        S = kv_in.shape[1]
        H, Dh = nhead, q_in.shape[-1] // nhead
        q = q_in @ in_w[:D].T + in_b[:D]
        k = kv_in @ in_w[D:2 * D].T + in_b[D:2 * D]
        v = kv_in @ in_w[2 * D:].T + in_b[2 * D:]
        q = q.reshape(B, Tq, H, Dh).transpose(0, 2, 1, 3)
        k = k.reshape(B, S, H, Dh).transpose(0, 2, 1, 3)
        v = v.reshape(B, S, H, Dh).transpose(0, 2, 1, 3)
        s = jnp.einsum('bhqd,bhkd->bhqk', q, k) / math.sqrt(Dh)
        if kpm is not None:
            s = s + jnp.where(kpm, -1e9, 0.0)[:, None, None, :]
        a = jax.nn.softmax(s, axis=-1)
        o = jnp.einsum('bhqk,bhkd->bhqd', a, v).transpose(0, 2, 1, 3).reshape(B, Tq, D)
        return o @ out_w.T + out_b

    x = tgt
    x = ln(x + mha(x, x, p["sa_in_w"], p["sa_in_b"], p["sa_out_w"], p["sa_out_b"], None),
           p["g1"], p["be1"])
    x = ln(x + mha(x, memory, p["ca_in_w"], p["ca_in_b"], p["ca_out_w"], p["ca_out_b"],
                   key_padding_mask), p["g2"], p["be2"])
    h = jax.nn.relu(x @ p["w1"].T + p["b1"])
    x = ln(x + h @ p["w2"].T + p["b2"], p["g3"], p["be3"])
    return x


if __name__ == "__main__":
    # Small shapes consistent with the module.
    B, T, S = 2, 8, 16            # batch, tgt seq, memory seq
    d_model, nhead, dim_ff = 32, 4, 64

    key = jax.random.PRNGKey(0)
    ks = jax.random.split(key, 20)
    init = lambda k, shape, s=0.2: s * jax.random.normal(k, shape, jnp.float32)

    params = dict(
        sa_in_w=init(ks[0], (3 * d_model, d_model)),
        sa_in_b=init(ks[1], (3 * d_model,)),
        sa_out_w=init(ks[2], (d_model, d_model)),
        sa_out_b=init(ks[3], (d_model,)),
        ca_in_w=init(ks[4], (3 * d_model, d_model)),
        ca_in_b=init(ks[5], (3 * d_model,)),
        ca_out_w=init(ks[6], (d_model, d_model)),
        ca_out_b=init(ks[7], (d_model,)),
        w1=init(ks[8], (dim_ff, d_model)),
        b1=init(ks[9], (dim_ff,)),
        w2=init(ks[10], (d_model, dim_ff)),
        b2=init(ks[11], (d_model,)),
        g1=jnp.ones((d_model,), jnp.float32) + init(ks[12], (d_model,), 0.05),
        be1=init(ks[13], (d_model,), 0.05),
        g2=jnp.ones((d_model,), jnp.float32) + init(ks[14], (d_model,), 0.05),
        be2=init(ks[15], (d_model,), 0.05),
        g3=jnp.ones((d_model,), jnp.float32) + init(ks[16], (d_model,), 0.05),
        be3=init(ks[17], (d_model,), 0.05),
    )
    tgt = jax.random.normal(ks[18], (B, T, d_model), jnp.float32)
    memory = jax.random.normal(ks[19], (B, S, d_model), jnp.float32)
    # key_padding_mask: True = ignore. Mask the last 3 memory positions of batch 1.
    mask = jnp.zeros((B, S), dtype=bool).at[1, S - 3:].set(True)

    packed = pack_params(params)          # hoisted one-time packing
    out = cross_attention_layer(tgt, memory, mask, packed, nhead=nhead)
    jax.block_until_ready(out)

    ref = _reference(tgt, memory, mask, params, nhead)
    assert out.shape == (B, T, d_model)
    max_err = float(jnp.max(jnp.abs(out - ref)))
    assert jnp.allclose(out, ref, atol=2e-4, rtol=2e-4), f"max abs err {max_err}"
    print("KERNEL_OK")
</pallas_src>

<mosaic_0001>
module attributes {stable_mosaic.version = 11 : i64} {
  func.func @_cross_attn_layer_kernel(%arg0: i32, %arg1: memref<1x8x32xf32, #tpu.memory_space<vmem>>, %arg2: memref<1x16x32xf32, #tpu.memory_space<vmem>>, %arg3: memref<1x1x16xf32, #tpu.memory_space<vmem>>, %arg4: memref<32x320xf32, #tpu.memory_space<vmem>>, %arg5: memref<64x32xf32, #tpu.memory_space<vmem>>, %arg6: memref<15x32xf32, #tpu.memory_space<vmem>>, %arg7: memref<1x64xf32, #tpu.memory_space<vmem>>, %arg8: memref<1x8x32xf32, #tpu.memory_space<vmem>>) attributes {dimension_semantics = [#tpu.dimension_semantics<parallel>], iteration_bounds = array<i64: 2>, scalar_prefetch = 0 : i64, scratch_operands = 0 : i64, tpu.core_type = #tpu.core_type<tc>, window_params = [{transform_indices = @transform_0, window_bounds = array<i64: 1, 8, 32>}, {transform_indices = @transform_1, window_bounds = array<i64: 1, 16, 32>}, {transform_indices = @transform_2, window_bounds = array<i64: 1, 1, 16>}, {pipeline_mode = #tpu.pipeline_mode<synchronous>, transform_indices = @transform_3, window_bounds = array<i64: 32, 320>}, {pipeline_mode = #tpu.pipeline_mode<synchronous>, transform_indices = @transform_4, window_bounds = array<i64: 64, 32>}, {pipeline_mode = #tpu.pipeline_mode<synchronous>, transform_indices = @transform_5, window_bounds = array<i64: 15, 32>}, {pipeline_mode = #tpu.pipeline_mode<synchronous>, transform_indices = @transform_6, window_bounds = array<i64: 1, 64>}, {transform_indices = @transform_7, window_bounds = array<i64: 1, 8, 32>}]} {
    %c0 = arith.constant 0 : index
    %c0_0 = arith.constant 0 : index
    %c0_1 = arith.constant 0 : index
    %0 = vector.load %arg1[%c0, %c0_0, %c0_1] : memref<1x8x32xf32, #tpu.memory_space<vmem>>, vector<1x8x32xf32>
    %1 = vector.shape_cast %0 : vector<1x8x32xf32> to vector<8x32xf32>
    %c0_2 = arith.constant 0 : index
    %c0_3 = arith.constant 0 : index
    %c0_4 = arith.constant 0 : index
    %2 = vector.load %arg2[%c0_2, %c0_3, %c0_4] : memref<1x16x32xf32, #tpu.memory_space<vmem>>, vector<1x16x32xf32>
    %3 = vector.shape_cast %2 : vector<1x16x32xf32> to vector<16x32xf32>
    %c0_5 = arith.constant 0 : index
    %c0_6 = arith.constant 0 : index
    %c0_7 = arith.constant 0 : index
    %4 = vector.load %arg3[%c0_5, %c0_6, %c0_7] : memref<1x1x16xf32, #tpu.memory_space<vmem>>, vector<1x1x16xf32>
    %5 = vector.shape_cast %4 : vector<1x1x16xf32> to vector<1x16xf32>
    %c0_8 = arith.constant 0 : index
    %c0_9 = arith.constant 0 : index
    %6 = vector.load %arg4[%c0_8, %c0_9] : memref<32x320xf32, #tpu.memory_space<vmem>>, vector<32x320xf32>
    %c0_10 = arith.constant 0 : index
    %c0_11 = arith.constant 0 : index
    %7 = vector.load %arg6[%c0_10, %c0_11] : memref<15x32xf32, #tpu.memory_space<vmem>>, vector<15x32xf32>
    %8 = vector.extract_strided_slice %6 {offsets = [0, 0], sizes = [32, 96], strides = [1, 1]} : vector<32x320xf32> to vector<32x96xf32>
    %cst = arith.constant dense<0.000000e+00> : vector<8x96xf32>
    %9 = tpu.matmul %1, %8, %cst {dimension_numbers = #tpu.dot_dimension_numbers<[1], [0], [0], [1], [0, 0, 1, 1], [], []>} : vector<8x32xf32>, vector<32x96xf32>, vector<8x96xf32> -> vector<8x96xf32>
    %10 = vector.extract_strided_slice %9 {offsets = [0, 0], sizes = [8, 32], strides = [1, 1]} : vector<8x96xf32> to vector<8x32xf32>
    %11 = vector.extract_strided_slice %7 {offsets = [0, 0], sizes = [1, 32], strides = [1, 1]} : vector<15x32xf32> to vector<1x32xf32>
    %12 = vector.broadcast %11 : vector<1x32xf32> to vector<8x32xf32>
    %13 = arith.addf %10, %12 : vector<8x32xf32>
    %14 = vector.extract_strided_slice %9 {offsets = [0, 32], sizes = [8, 32], strides = [1, 1]} : vector<8x96xf32> to vector<8x32xf32>
    %15 = vector.extract_strided_slice %7 {offsets = [1, 0], sizes = [1, 32], strides = [1, 1]} : vector<15x32xf32> to vector<1x32xf32>
    %16 = vector.broadcast %15 : vector<1x32xf32> to vector<8x32xf32>
    %17 = arith.addf %14, %16 : vector<8x32xf32>
    %18 = vector.extract_strided_slice %9 {offsets = [0, 64], sizes = [8, 32], strides = [1, 1]} : vector<8x96xf32> to vector<8x32xf32>
    %19 = vector.extract_strided_slice %7 {offsets = [2, 0], sizes = [1, 32], strides = [1, 1]} : vector<15x32xf32> to vector<1x32xf32>
    %20 = vector.broadcast %19 : vector<1x32xf32> to vector<8x32xf32>
    %21 = arith.addf %18, %20 : vector<8x32xf32>
    %22 = vector.extract_strided_slice %13 {offsets = [0, 0], sizes = [8, 8], strides = [1, 1]} : vector<8x32xf32> to vector<8x8xf32>
    %23 = vector.extract_strided_slice %17 {offsets = [0, 0], sizes = [8, 8], strides = [1, 1]} : vector<8x32xf32> to vector<8x8xf32>
    "tpu.trace_start"() <{level = 10 : i32, message = "qd,kd->qk"}> : () -> ()
    %cst_12 = arith.constant dense<0.000000e+00> : vector<8x8xf32>
    %24 = tpu.matmul %22, %23, %cst_12 {dimension_numbers = #tpu.dot_dimension_numbers<[1], [1], [0], [0], [0, 0, 1, 0], [], []>} : vector<8x8xf32>, vector<8x8xf32>, vector<8x8xf32> -> vector<8x8xf32>
    "tpu.trace_stop"() : () -> ()
    %cst_13 = arith.constant 0.353553385 : f32
    %25 = vector.broadcast %cst_13 : f32 to vector<8x8xf32>
    %26 = arith.mulf %24, %25 : vector<8x8xf32>
    %cst_14 = arith.constant dense<0xFF800000> : vector<8xf32>
    %27 = vector.multi_reduction <maximumf>, %26, %cst_14 [1] : vector<8x8xf32> to vector<8xf32>
    %28 = vector.shape_cast %27 : vector<8xf32> to vector<8x1xf32>
    %29 = vector.broadcast %28 : vector<8x1xf32> to vector<8x8xf32>
    %30 = arith.subf %26, %29 : vector<8x8xf32>
    %31 = math.exp %30 : vector<8x8xf32>
    %cst_15 = arith.constant dense<0.000000e+00> : vector<8xf32>
    %32 = vector.multi_reduction <add>, %31, %cst_15 [1] : vector<8x8xf32> to vector<8xf32>
    %33 = vector.shape_cast %32 : vector<8xf32> to vector<8x1xf32>
    %34 = vector.broadcast %33 : vector<8x1xf32> to vector<8x8xf32>
    %35 = arith.divf %31, %34 : vector<8x8xf32>
    %36 = vector.extract_strided_slice %21 {offsets = [0, 0], sizes = [8, 8], strides = [1, 1]} : vector<8x32xf32> to vector<8x8xf32>
    %cst_16 = arith.constant dense<0.000000e+00> : vector<8x8xf32>
    %37 = tpu.matmul %35, %36, %cst_16 {dimension_numbers = #tpu.dot_dimension_numbers<[1], [0], [0], [1], [0, 0, 1, 1], [], []>} : vector<8x8xf32>, vector<8x8xf32>, vector<8x8xf32> -> vector<8x8xf32>
    %38 = vector.extract_strided_slice %13 {offsets = [0, 8], sizes = [8, 8], strides = [1, 1]} : vector<8x32xf32> to vector<8x8xf32>
    %39 = vector.extract_strided_slice %17 {offsets = [0, 8], sizes = [8, 8], strides = [1, 1]} : vector<8x32xf32> to vector<8x8xf32>
    "tpu.trace_start"() <{level = 10 : i32, message = "qd,kd->qk"}> : () -> ()
    %cst_17 = arith.constant dense<0.000000e+00> : vector<8x8xf32>
    %40 = tpu.matmul %38, %39, %cst_17 {dimension_numbers = #tpu.dot_dimension_numbers<[1], [1], [0], [0], [0, 0, 1, 0], [], []>} : vector<8x8xf32>, vector<8x8xf32>, vector<8x8xf32> -> vector<8x8xf32>
    "tpu.trace_stop"() : () -> ()
    %cst_18 = arith.constant 0.353553385 : f32
    %41 = vector.broadcast %cst_18 : f32 to vector<8x8xf32>
    %42 = arith.mulf %40, %41 : vector<8x8xf32>
    %cst_19 = arith.constant dense<0xFF800000> : vector<8xf32>
    %43 = vector.multi_reduction <maximumf>, %42, %cst_19 [1] : vector<8x8xf32> to vector<8xf32>
    %44 = vector.shape_cast %43 : vector<8xf32> to vector<8x1xf32>
    %45 = vector.broadcast %44 : vector<8x1xf32> to vector<8x8xf32>
    %46 = arith.subf %42, %45 : vector<8x8xf32>
    %47 = math.exp %46 : vector<8x8xf32>
    %cst_20 = arith.constant dense<0.000000e+00> : vector<8xf32>
    %48 = vector.multi_reduction <add>, %47, %cst_20 [1] : vector<8x8xf32> to vector<8xf32>
    %49 = vector.shape_cast %48 : vector<8xf32> to vector<8x1xf32>
    %50 = vector.broadcast %49 : vector<8x1xf32> to vector<8x8xf32>
    %51 = arith.divf %47, %50 : vector<8x8xf32>
    %52 = vector.extract_strided_slice %21 {offsets = [0, 8], sizes = [8, 8], strides = [1, 1]} : vector<8x32xf32> to vector<8x8xf32>
    %cst_21 = arith.constant dense<0.000000e+00> : vector<8x8xf32>
    %53 = tpu.matmul %51, %52, %cst_21 {dimension_numbers = #tpu.dot_dimension_numbers<[1], [0], [0], [1], [0, 0, 1, 1], [], []>} : vector<8x8xf32>, vector<8x8xf32>, vector<8x8xf32> -> vector<8x8xf32>
    %54 = vector.extract_strided_slice %13 {offsets = [0, 16], sizes = [8, 8], strides = [1, 1]} : vector<8x32xf32> to vector<8x8xf32>
    %55 = vector.extract_strided_slice %17 {offsets = [0, 16], sizes = [8, 8], strides = [1, 1]} : vector<8x32xf32> to vector<8x8xf32>
    "tpu.trace_start"() <{level = 10 : i32, message = "qd,kd->qk"}> : () -> ()
    %cst_22 = arith.constant dense<0.000000e+00> : vector<8x8xf32>
    %56 = tpu.matmul %54, %55, %cst_22 {dimension_numbers = #tpu.dot_dimension_numbers<[1], [1], [0], [0], [0, 0, 1, 0], [], []>} : vector<8x8xf32>, vector<8x8xf32>, vector<8x8xf32> -> vector<8x8xf32>
    "tpu.trace_stop"() : () -> ()
    %cst_23 = arith.constant 0.353553385 : f32
    %57 = vector.broadcast %cst_23 : f32 to vector<8x8xf32>
    %58 = arith.mulf %56, %57 : vector<8x8xf32>
    %cst_24 = arith.constant dense<0xFF800000> : vector<8xf32>
    %59 = vector.multi_reduction <maximumf>, %58, %cst_24 [1] : vector<8x8xf32> to vector<8xf32>
    %60 = vector.shape_cast %59 : vector<8xf32> to vector<8x1xf32>
    %61 = vector.broadcast %60 : vector<8x1xf32> to vector<8x8xf32>
    %62 = arith.subf %58, %61 : vector<8x8xf32>
    %63 = math.exp %62 : vector<8x8xf32>
    %cst_25 = arith.constant dense<0.000000e+00> : vector<8xf32>
    %64 = vector.multi_reduction <add>, %63, %cst_25 [1] : vector<8x8xf32> to vector<8xf32>
    %65 = vector.shape_cast %64 : vector<8xf32> to vector<8x1xf32>
    %66 = vector.broadcast %65 : vector<8x1xf32> to vector<8x8xf32>
    %67 = arith.divf %63, %66 : vector<8x8xf32>
    %68 = vector.extract_strided_slice %21 {offsets = [0, 16], sizes = [8, 8], strides = [1, 1]} : vector<8x32xf32> to vector<8x8xf32>
    %cst_26 = arith.constant dense<0.000000e+00> : vector<8x8xf32>
    %69 = tpu.matmul %67, %68, %cst_26 {dimension_numbers = #tpu.dot_dimension_numbers<[1], [0], [0], [1], [0, 0, 1, 1], [], []>} : vector<8x8xf32>, vector<8x8xf32>, vector<8x8xf32> -> vector<8x8xf32>
    %70 = vector.extract_strided_slice %13 {offsets = [0, 24], sizes = [8, 8], strides = [1, 1]} : vector<8x32xf32> to vector<8x8xf32>
    %71 = vector.extract_strided_slice %17 {offsets = [0, 24], sizes = [8, 8], strides = [1, 1]} : vector<8x32xf32> to vector<8x8xf32>
    "tpu.trace_start"() <{level = 10 : i32, message = "qd,kd->qk"}> : () -> ()
    %cst_27 = arith.constant dense<0.000000e+00> : vector<8x8xf32>
    %72 = tpu.matmul %70, %71, %cst_27 {dimension_numbers = #tpu.dot_dimension_numbers<[1], [1], [0], [0], [0, 0, 1, 0], [], []>} : vector<8x8xf32>, vector<8x8xf32>, vector<8x8xf32> -> vector<8x8xf32>
    "tpu.trace_stop"() : () -> ()
    %cst_28 = arith.constant 0.353553385 : f32
    %73 = vector.broadcast %cst_28 : f32 to vector<8x8xf32>
    %74 = arith.mulf %72, %73 : vector<8x8xf32>
    %cst_29 = arith.constant dense<0xFF800000> : vector<8xf32>
    %75 = vector.multi_reduction <maximumf>, %74, %cst_29 [1] : vector<8x8xf32> to vector<8xf32>
    %76 = vector.shape_cast %75 : vector<8xf32> to vector<8x1xf32>
    %77 = vector.broadcast %76 : vector<8x1xf32> to vector<8x8xf32>
    %78 = arith.subf %74, %77 : vector<8x8xf32>
    %79 = math.exp %78 : vector<8x8xf32>
    %cst_30 = arith.constant dense<0.000000e+00> : vector<8xf32>
    %80 = vector.multi_reduction <add>, %79, %cst_30 [1] : vector<8x8xf32> to vector<8xf32>
    %81 = vector.shape_cast %80 : vector<8xf32> to vector<8x1xf32>
    %82 = vector.broadcast %81 : vector<8x1xf32> to vector<8x8xf32>
    %83 = arith.divf %79, %82 : vector<8x8xf32>
    %84 = vector.extract_strided_slice %21 {offsets = [0, 24], sizes = [8, 8], strides = [1, 1]} : vector<8x32xf32> to vector<8x8xf32>
    %cst_31 = arith.constant dense<0.000000e+00> : vector<8x8xf32>
    %85 = tpu.matmul %83, %84, %cst_31 {dimension_numbers = #tpu.dot_dimension_numbers<[1], [0], [0], [1], [0, 0, 1, 1], [], []>} : vector<8x8xf32>, vector<8x8xf32>, vector<8x8xf32> -> vector<8x8xf32>
    %86 = tpu.concatenate %37, %53, %69, %85 in 1 : vector<8x8xf32>, vector<8x8xf32>, vector<8x8xf32>, vector<8x8xf32> -> vector<8x32xf32>
    %87 = vector.extract_strided_slice %6 {offsets = [0, 192], sizes = [32, 32], strides = [1, 1]} : vector<32x320xf32> to vector<32x32xf32>
    %cst_32 = arith.constant dense<0.000000e+00> : vector<8x32xf32>
    %88 = tpu.matmul %86, %87, %cst_32 {dimension_numbers = #tpu.dot_dimension_numbers<[1], [0], [0], [1], [0, 0, 1, 1], [], []>} : vector<8x32xf32>, vector<32x32xf32>, vector<8x32xf32> -> vector<8x32xf32>
    %89 = vector.extract_strided_slice %7 {offsets = [3, 0], sizes = [1, 32], strides = [1, 1]} : vector<15x32xf32> to vector<1x32xf32>
    %90 = vector.broadcast %89 : vector<1x32xf32> to vector<8x32xf32>
    %91 = arith.addf %88, %90 : vector<8x32xf32>
    %92 = arith.addf %1, %91 : vector<8x32xf32>
    %cst_33 = arith.constant dense<0.000000e+00> : vector<8xf32>
    %93 = vector.multi_reduction <add>, %92, %cst_33 [1] : vector<8x32xf32> to vector<8xf32>
    %94 = vector.shape_cast %93 : vector<8xf32> to vector<8x1xf32>
    %cst_34 = arith.constant 3.200000e+01 : f32
    %95 = vector.broadcast %cst_34 : f32 to vector<8x1xf32>
    %96 = arith.divf %94, %95 : vector<8x1xf32>
    %97 = vector.broadcast %96 : vector<8x1xf32> to vector<8x32xf32>
    %98 = arith.subf %92, %97 : vector<8x32xf32>
    %99 = arith.mulf %98, %98 : vector<8x32xf32>
    %cst_35 = arith.constant dense<0.000000e+00> : vector<8xf32>
    %100 = vector.multi_reduction <add>, %99, %cst_35 [1] : vector<8x32xf32> to vector<8xf32>
    %101 = vector.shape_cast %100 : vector<8xf32> to vector<8x1xf32>
    %cst_36 = arith.constant 3.200000e+01 : f32
    %102 = vector.broadcast %cst_36 : f32 to vector<8x1xf32>
    %103 = arith.divf %101, %102 : vector<8x1xf32>
    %cst_37 = arith.constant 9.99999974E-6 : f32
    %104 = vector.broadcast %cst_37 : f32 to vector<8x1xf32>
    %105 = arith.addf %103, %104 : vector<8x1xf32>
    %106 = math.rsqrt %105 : vector<8x1xf32>
    %107 = vector.broadcast %106 : vector<8x1xf32> to vector<8x32xf32>
    %108 = arith.mulf %98, %107 : vector<8x32xf32>
    %109 = vector.extract_strided_slice %7 {offsets = [9, 0], sizes = [1, 32], strides = [1, 1]} : vector<15x32xf32> to vector<1x32xf32>
    %110 = vector.broadcast %109 : vector<1x32xf32> to vector<8x32xf32>
    %111 = arith.mulf %108, %110 : vector<8x32xf32>
    %112 = vector.extract_strided_slice %7 {offsets = [10, 0], sizes = [1, 32], strides = [1, 1]} : vector<15x32xf32> to vector<1x32xf32>
    %113 = vector.broadcast %112 : vector<1x32xf32> to vector<8x32xf32>
    %114 = arith.addf %111, %113 : vector<8x32xf32>
    %115 = vector.extract_strided_slice %6 {offsets = [0, 96], sizes = [32, 32], strides = [1, 1]} : vector<32x320xf32> to vector<32x32xf32>
    %cst_38 = arith.constant dense<0.000000e+00> : vector<8x32xf32>
    %116 = tpu.matmul %114, %115, %cst_38 {dimension_numbers = #tpu.dot_dimension_numbers<[1], [0], [0], [1], [0, 0, 1, 1], [], []>} : vector<8x32xf32>, vector<32x32xf32>, vector<8x32xf32> -> vector<8x32xf32>
    %117 = vector.extract_strided_slice %7 {offsets = [4, 0], sizes = [1, 32], strides = [1, 1]} : vector<15x32xf32> to vector<1x32xf32>
    %118 = vector.broadcast %117 : vector<1x32xf32> to vector<8x32xf32>
    %119 = arith.addf %116, %118 : vector<8x32xf32>
    %120 = vector.extract_strided_slice %6 {offsets = [0, 128], sizes = [32, 64], strides = [1, 1]} : vector<32x320xf32> to vector<32x64xf32>
    %cst_39 = arith.constant dense<0.000000e+00> : vector<16x64xf32>
    %121 = tpu.matmul %3, %120, %cst_39 {dimension_numbers = #tpu.dot_dimension_numbers<[1], [0], [0], [1], [0, 0, 1, 1], [], []>} : vector<16x32xf32>, vector<32x64xf32>, vector<16x64xf32> -> vector<16x64xf32>
    %122 = vector.extract_strided_slice %121 {offsets = [0, 0], sizes = [16, 32], strides = [1, 1]} : vector<16x64xf32> to vector<16x32xf32>
    %123 = vector.extract_strided_slice %7 {offsets = [5, 0], sizes = [1, 32], strides = [1, 1]} : vector<15x32xf32> to vector<1x32xf32>
    %124 = vector.broadcast %123 : vector<1x32xf32> to vector<16x32xf32>
    %125 = arith.addf %122, %124 : vector<16x32xf32>
    %126 = vector.extract_strided_slice %121 {offsets = [0, 32], sizes = [16, 32], strides = [1, 1]} : vector<16x64xf32> to vector<16x32xf32>
    %127 = vector.extract_strided_slice %7 {offsets = [6, 0], sizes = [1, 32], strides = [1, 1]} : vector<15x32xf32> to vector<1x32xf32>
    %128 = vector.broadcast %127 : vector<1x32xf32> to vector<16x32xf32>
    %129 = arith.addf %126, %128 : vector<16x32xf32>
    %130 = vector.extract_strided_slice %119 {offsets = [0, 0], sizes = [8, 8], strides = [1, 1]} : vector<8x32xf32> to vector<8x8xf32>
    %131 = vector.extract_strided_slice %125 {offsets = [0, 0], sizes = [16, 8], strides = [1, 1]} : vector<16x32xf32> to vector<16x8xf32>
    "tpu.trace_start"() <{level = 10 : i32, message = "qd,kd->qk"}> : () -> ()
    %cst_40 = arith.constant dense<0.000000e+00> : vector<8x16xf32>
    %132 = tpu.matmul %130, %131, %cst_40 {dimension_numbers = #tpu.dot_dimension_numbers<[1], [1], [0], [0], [0, 0, 1, 0], [], []>} : vector<8x8xf32>, vector<16x8xf32>, vector<8x16xf32> -> vector<8x16xf32>
    "tpu.trace_stop"() : () -> ()
    %cst_41 = arith.constant 0.353553385 : f32
    %133 = vector.broadcast %cst_41 : f32 to vector<8x16xf32>
    %134 = arith.mulf %132, %133 : vector<8x16xf32>
    %135 = vector.broadcast %5 : vector<1x16xf32> to vector<8x16xf32>
    %136 = arith.addf %134, %135 : vector<8x16xf32>
    %cst_42 = arith.constant dense<0xFF800000> : vector<8xf32>
    %137 = vector.multi_reduction <maximumf>, %136, %cst_42 [1] : vector<8x16xf32> to vector<8xf32>
    %138 = vector.shape_cast %137 : vector<8xf32> to vector<8x1xf32>
    %139 = vector.broadcast %138 : vector<8x1xf32> to vector<8x16xf32>
    %140 = arith.subf %136, %139 : vector<8x16xf32>
    %141 = math.exp %140 : vector<8x16xf32>
    %cst_43 = arith.constant dense<0.000000e+00> : vector<8xf32>
    %142 = vector.multi_reduction <add>, %141, %cst_43 [1] : vector<8x16xf32> to vector<8xf32>
    %143 = vector.shape_cast %142 : vector<8xf32> to vector<8x1xf32>
    %144 = vector.broadcast %143 : vector<8x1xf32> to vector<8x16xf32>
    %145 = arith.divf %141, %144 : vector<8x16xf32>
    %146 = vector.extract_strided_slice %129 {offsets = [0, 0], sizes = [16, 8], strides = [1, 1]} : vector<16x32xf32> to vector<16x8xf32>
    %cst_44 = arith.constant dense<0.000000e+00> : vector<8x8xf32>
    %147 = tpu.matmul %145, %146, %cst_44 {dimension_numbers = #tpu.dot_dimension_numbers<[1], [0], [0], [1], [0, 0, 1, 1], [], []>} : vector<8x16xf32>, vector<16x8xf32>, vector<8x8xf32> -> vector<8x8xf32>
    %148 = vector.extract_strided_slice %119 {offsets = [0, 8], sizes = [8, 8], strides = [1, 1]} : vector<8x32xf32> to vector<8x8xf32>
    %149 = vector.extract_strided_slice %125 {offsets = [0, 8], sizes = [16, 8], strides = [1, 1]} : vector<16x32xf32> to vector<16x8xf32>
    "tpu.trace_start"() <{level = 10 : i32, message = "qd,kd->qk"}> : () -> ()
    %cst_45 = arith.constant dense<0.000000e+00> : vector<8x16xf32>
    %150 = tpu.matmul %148, %149, %cst_45 {dimension_numbers = #tpu.dot_dimension_numbers<[1], [1], [0], [0], [0, 0, 1, 0], [], []>} : vector<8x8xf32>, vector<16x8xf32>, vector<8x16xf32> -> vector<8x16xf32>
    "tpu.trace_stop"() : () -> ()
    %cst_46 = arith.constant 0.353553385 : f32
    %151 = vector.broadcast %cst_46 : f32 to vector<8x16xf32>
    %152 = arith.mulf %150, %151 : vector<8x16xf32>
    %153 = vector.broadcast %5 : vector<1x16xf32> to vector<8x16xf32>
    %154 = arith.addf %152, %153 : vector<8x16xf32>
    %cst_47 = arith.constant dense<0xFF800000> : vector<8xf32>
    %155 = vector.multi_reduction <maximumf>, %154, %cst_47 [1] : vector<8x16xf32> to vector<8xf32>
    %156 = vector.shape_cast %155 : vector<8xf32> to vector<8x1xf32>
    %157 = vector.broadcast %156 : vector<8x1xf32> to vector<8x16xf32>
    %158 = arith.subf %154, %157 : vector<8x16xf32>
    %159 = math.exp %158 : vector<8x16xf32>
    %cst_48 = arith.constant dense<0.000000e+00> : vector<8xf32>
    %160 = vector.multi_reduction <add>, %159, %cst_48 [1] : vector<8x16xf32> to vector<8xf32>
    %161 = vector.shape_cast %160 : vector<8xf32> to vector<8x1xf32>
    %162 = vector.broadcast %161 : vector<8x1xf32> to vector<8x16xf32>
    %163 = arith.divf %159, %162 : vector<8x16xf32>
    %164 = vector.extract_strided_slice %129 {offsets = [0, 8], sizes = [16, 8], strides = [1, 1]} : vector<16x32xf32> to vector<16x8xf32>
    %cst_49 = arith.constant dense<0.000000e+00> : vector<8x8xf32>
    %165 = tpu.matmul %163, %164, %cst_49 {dimension_numbers = #tpu.dot_dimension_numbers<[1], [0], [0], [1], [0, 0, 1, 1], [], []>} : vector<8x16xf32>, vector<16x8xf32>, vector<8x8xf32> -> vector<8x8xf32>
    %166 = vector.extract_strided_slice %119 {offsets = [0, 16], sizes = [8, 8], strides = [1, 1]} : vector<8x32xf32> to vector<8x8xf32>
    %167 = vector.extract_strided_slice %125 {offsets = [0, 16], sizes = [16, 8], strides = [1, 1]} : vector<16x32xf32> to vector<16x8xf32>
    "tpu.trace_start"() <{level = 10 : i32, message = "qd,kd->qk"}> : () -> ()
    %cst_50 = arith.constant dense<0.000000e+00> : vector<8x16xf32>
    %168 = tpu.matmul %166, %167, %cst_50 {dimension_numbers = #tpu.dot_dimension_numbers<[1], [1], [0], [0], [0, 0, 1, 0], [], []>} : vector<8x8xf32>, vector<16x8xf32>, vector<8x16xf32> -> vector<8x16xf32>
    "tpu.trace_stop"() : () -> ()
    %cst_51 = arith.constant 0.353553385 : f32
    %169 = vector.broadcast %cst_51 : f32 to vector<8x16xf32>
    %170 = arith.mulf %168, %169 : vector<8x16xf32>
    %171 = vector.broadcast %5 : vector<1x16xf32> to vector<8x16xf32>
    %172 = arith.addf %170, %171 : vector<8x16xf32>
    %cst_52 = arith.constant dense<0xFF800000> : vector<8xf32>
    %173 = vector.multi_reduction <maximumf>, %172, %cst_52 [1] : vector<8x16xf32> to vector<8xf32>
    %174 = vector.shape_cast %173 : vector<8xf32> to vector<8x1xf32>
    %175 = vector.broadcast %174 : vector<8x1xf32> to vector<8x16xf32>
    %176 = arith.subf %172, %175 : vector<8x16xf32>
    %177 = math.exp %176 : vector<8x16xf32>
    %cst_53 = arith.constant dense<0.000000e+00> : vector<8xf32>
    %178 = vector.multi_reduction <add>, %177, %cst_53 [1] : vector<8x16xf32> to vector<8xf32>
    %179 = vector.shape_cast %178 : vector<8xf32> to vector<8x1xf32>
    %180 = vector.broadcast %179 : vector<8x1xf32> to vector<8x16xf32>
    %181 = arith.divf %177, %180 : vector<8x16xf32>
    %182 = vector.extract_strided_slice %129 {offsets = [0, 16], sizes = [16, 8], strides = [1, 1]} : vector<16x32xf32> to vector<16x8xf32>
    %cst_54 = arith.constant dense<0.000000e+00> : vector<8x8xf32>
    %183 = tpu.matmul %181, %182, %cst_54 {dimension_numbers = #tpu.dot_dimension_numbers<[1], [0], [0], [1], [0, 0, 1, 1], [], []>} : vector<8x16xf32>, vector<16x8xf32>, vector<8x8xf32> -> vector<8x8xf32>
    %184 = vector.extract_strided_slice %119 {offsets = [0, 24], sizes = [8, 8], strides = [1, 1]} : vector<8x32xf32> to vector<8x8xf32>
    %185 = vector.extract_strided_slice %125 {offsets = [0, 24], sizes = [16, 8], strides = [1, 1]} : vector<16x32xf32> to vector<16x8xf32>
    "tpu.trace_start"() <{level = 10 : i32, message = "qd,kd->qk"}> : () -> ()
    %cst_55 = arith.constant dense<0.000000e+00> : vector<8x16xf32>
    %186 = tpu.matmul %184, %185, %cst_55 {dimension_numbers = #tpu.dot_dimension_numbers<[1], [1], [0], [0], [0, 0, 1, 0], [], []>} : vector<8x8xf32>, vector<16x8xf32>, vector<8x16xf32> -> vector<8x16xf32>
    "tpu.trace_stop"() : () -> ()
    %cst_56 = arith.constant 0.353553385 : f32
    %187 = vector.broadcast %cst_56 : f32 to vector<8x16xf32>
    %188 = arith.mulf %186, %187 : vector<8x16xf32>
    %189 = vector.broadcast %5 : vector<1x16xf32> to vector<8x16xf32>
    %190 = arith.addf %188, %189 : vector<8x16xf32>
    %cst_57 = arith.constant dense<0xFF800000> : vector<8xf32>
    %191 = vector.multi_reduction <maximumf>, %190, %cst_57 [1] : vector<8x16xf32> to vector<8xf32>
    %192 = vector.shape_cast %191 : vector<8xf32> to vector<8x1xf32>
    %193 = vector.broadcast %192 : vector<8x1xf32> to vector<8x16xf32>
    %194 = arith.subf %190, %193 : vector<8x16xf32>
    %195 = math.exp %194 : vector<8x16xf32>
    %cst_58 = arith.constant dense<0.000000e+00> : vector<8xf32>
    %196 = vector.multi_reduction <add>, %195, %cst_58 [1] : vector<8x16xf32> to vector<8xf32>
    %197 = vector.shape_cast %196 : vector<8xf32> to vector<8x1xf32>
    %198 = vector.broadcast %197 : vector<8x1xf32> to vector<8x16xf32>
    %199 = arith.divf %195, %198 : vector<8x16xf32>
    %200 = vector.extract_strided_slice %129 {offsets = [0, 24], sizes = [16, 8], strides = [1, 1]} : vector<16x32xf32> to vector<16x8xf32>
    %cst_59 = arith.constant dense<0.000000e+00> : vector<8x8xf32>
    %201 = tpu.matmul %199, %200, %cst_59 {dimension_numbers = #tpu.dot_dimension_numbers<[1], [0], [0], [1], [0, 0, 1, 1], [], []>} : vector<8x16xf32>, vector<16x8xf32>, vector<8x8xf32> -> vector<8x8xf32>
    %202 = tpu.concatenate %147, %165, %183, %201 in 1 : vector<8x8xf32>, vector<8x8xf32>, vector<8x8xf32>, vector<8x8xf32> -> vector<8x32xf32>
    %203 = vector.extract_strided_slice %6 {offsets = [0, 224], sizes = [32, 32], strides = [1, 1]} : vector<32x320xf32> to vector<32x32xf32>
    %cst_60 = arith.constant dense<0.000000e+00> : vector<8x32xf32>
    %204 = tpu.matmul %202, %203, %cst_60 {dimension_numbers = #tpu.dot_dimension_numbers<[1], [0], [0], [1], [0, 0, 1, 1], [], []>} : vector<8x32xf32>, vector<32x32xf32>, vector<8x32xf32> -> vector<8x32xf32>
    %205 = vector.extract_strided_slice %7 {offsets = [7, 0], sizes = [1, 32], strides = [1, 1]} : vector<15x32xf32> to vector<1x32xf32>
    %206 = vector.broadcast %205 : vector<1x32xf32> to vector<8x32xf32>
    %207 = arith.addf %204, %206 : vector<8x32xf32>
    %208 = arith.addf %114, %207 : vector<8x32xf32>
    %cst_61 = arith.constant dense<0.000000e+00> : vector<8xf32>
    %209 = vector.multi_reduction <add>, %208, %cst_61 [1] : vector<8x32xf32> to vector<8xf32>
    %210 = vector.shape_cast %209 : vector<8xf32> to vector<8x1xf32>
    %cst_62 = arith.constant 3.200000e+01 : f32
    %211 = vector.broadcast %cst_62 : f32 to vector<8x1xf32>
    %212 = arith.divf %210, %211 : vector<8x1xf32>
    %213 = vector.broadcast %212 : vector<8x1xf32> to vector<8x32xf32>
    %214 = arith.subf %208, %213 : vector<8x32xf32>
    %215 = arith.mulf %214, %214 : vector<8x32xf32>
    %cst_63 = arith.constant dense<0.000000e+00> : vector<8xf32>
    %216 = vector.multi_reduction <add>, %215, %cst_63 [1] : vector<8x32xf32> to vector<8xf32>
    %217 = vector.shape_cast %216 : vector<8xf32> to vector<8x1xf32>
    %cst_64 = arith.constant 3.200000e+01 : f32
    %218 = vector.broadcast %cst_64 : f32 to vector<8x1xf32>
    %219 = arith.divf %217, %218 : vector<8x1xf32>
    %cst_65 = arith.constant 9.99999974E-6 : f32
    %220 = vector.broadcast %cst_65 : f32 to vector<8x1xf32>
    %221 = arith.addf %219, %220 : vector<8x1xf32>
    %222 = math.rsqrt %221 : vector<8x1xf32>
    %223 = vector.broadcast %222 : vector<8x1xf32> to vector<8x32xf32>
    %224 = arith.mulf %214, %223 : vector<8x32xf32>
    %225 = vector.extract_strided_slice %7 {offsets = [11, 0], sizes = [1, 32], strides = [1, 1]} : vector<15x32xf32> to vector<1x32xf32>
    %226 = vector.broadcast %225 : vector<1x32xf32> to vector<8x32xf32>
    %227 = arith.mulf %224, %226 : vector<8x32xf32>
    %228 = vector.extract_strided_slice %7 {offsets = [12, 0], sizes = [1, 32], strides = [1, 1]} : vector<15x32xf32> to vector<1x32xf32>
    %229 = vector.broadcast %228 : vector<1x32xf32> to vector<8x32xf32>
    %230 = arith.addf %227, %229 : vector<8x32xf32>
    %231 = vector.extract_strided_slice %6 {offsets = [0, 256], sizes = [32, 64], strides = [1, 1]} : vector<32x320xf32> to vector<32x64xf32>
    %cst_66 = arith.constant dense<0.000000e+00> : vector<8x64xf32>
    %232 = tpu.matmul %230, %231, %cst_66 {dimension_numbers = #tpu.dot_dimension_numbers<[1], [0], [0], [1], [0, 0, 1, 1], [], []>} : vector<8x32xf32>, vector<32x64xf32>, vector<8x64xf32> -> vector<8x64xf32>
    %c0_67 = arith.constant 0 : index
    %c0_68 = arith.constant 0 : index
    %233 = vector.load %arg7[%c0_67, %c0_68] : memref<1x64xf32, #tpu.memory_space<vmem>>, vector<1x64xf32>
    %234 = vector.broadcast %233 : vector<1x64xf32> to vector<8x64xf32>
    %235 = arith.addf %232, %234 : vector<8x64xf32>
    %cst_69 = arith.constant 0.000000e+00 : f32
    %236 = vector.broadcast %cst_69 : f32 to vector<8x64xf32>
    %237 = arith.maximumf %235, %236 : vector<8x64xf32>
    %c0_70 = arith.constant 0 : index
    %c0_71 = arith.constant 0 : index
    %238 = vector.load %arg5[%c0_70, %c0_71] : memref<64x32xf32, #tpu.memory_space<vmem>>, vector<64x32xf32>
    %cst_72 = arith.constant dense<0.000000e+00> : vector<8x32xf32>
    %239 = tpu.matmul %237, %238, %cst_72 {dimension_numbers = #tpu.dot_dimension_numbers<[1], [0], [0], [1], [0, 0, 1, 1], [], []>} : vector<8x64xf32>, vector<64x32xf32>, vector<8x32xf32> -> vector<8x32xf32>
    %240 = vector.extract_strided_slice %7 {offsets = [8, 0], sizes = [1, 32], strides = [1, 1]} : vector<15x32xf32> to vector<1x32xf32>
    %241 = vector.broadcast %240 : vector<1x32xf32> to vector<8x32xf32>
    %242 = arith.addf %239, %241 : vector<8x32xf32>
    %243 = arith.addf %230, %242 : vector<8x32xf32>
    %cst_73 = arith.constant dense<0.000000e+00> : vector<8xf32>
    %244 = vector.multi_reduction <add>, %243, %cst_73 [1] : vector<8x32xf32> to vector<8xf32>
    %245 = vector.shape_cast %244 : vector<8xf32> to vector<8x1xf32>
    %cst_74 = arith.constant 3.200000e+01 : f32
    %246 = vector.broadcast %cst_74 : f32 to vector<8x1xf32>
    %247 = arith.divf %245, %246 : vector<8x1xf32>
    %248 = vector.broadcast %247 : vector<8x1xf32> to vector<8x32xf32>
    %249 = arith.subf %243, %248 : vector<8x32xf32>
    %250 = arith.mulf %249, %249 : vector<8x32xf32>
    %cst_75 = arith.constant dense<0.000000e+00> : vector<8xf32>
    %251 = vector.multi_reduction <add>, %250, %cst_75 [1] : vector<8x32xf32> to vector<8xf32>
    %252 = vector.shape_cast %251 : vector<8xf32> to vector<8x1xf32>
    %cst_76 = arith.constant 3.200000e+01 : f32
    %253 = vector.broadcast %cst_76 : f32 to vector<8x1xf32>
    %254 = arith.divf %252, %253 : vector<8x1xf32>
    %cst_77 = arith.constant 9.99999974E-6 : f32
    %255 = vector.broadcast %cst_77 : f32 to vector<8x1xf32>
    %256 = arith.addf %254, %255 : vector<8x1xf32>
    %257 = math.rsqrt %256 : vector<8x1xf32>
    %258 = vector.broadcast %257 : vector<8x1xf32> to vector<8x32xf32>
    %259 = arith.mulf %249, %258 : vector<8x32xf32>
    %260 = vector.extract_strided_slice %7 {offsets = [13, 0], sizes = [1, 32], strides = [1, 1]} : vector<15x32xf32> to vector<1x32xf32>
    %261 = vector.broadcast %260 : vector<1x32xf32> to vector<8x32xf32>
    %262 = arith.mulf %259, %261 : vector<8x32xf32>
    %263 = vector.extract_strided_slice %7 {offsets = [14, 0], sizes = [1, 32], strides = [1, 1]} : vector<15x32xf32> to vector<1x32xf32>
    %264 = vector.broadcast %263 : vector<1x32xf32> to vector<8x32xf32>
    %265 = arith.addf %262, %264 : vector<8x32xf32>
    %c0_78 = arith.constant 0 : index
    %c0_79 = arith.constant 0 : index
    %c0_80 = arith.constant 0 : index
    %266 = vector.load %arg8[%c0_78, %c0_79, %c0_80] : memref<1x8x32xf32, #tpu.memory_space<vmem>>, vector<1x8x32xf32>
    %267 = vector.shape_cast %266 : vector<1x8x32xf32> to vector<8x32xf32>
    %268 = vector.shape_cast %265 : vector<8x32xf32> to vector<1x8x32xf32>
    tpu.vector_store %arg8[%c0_78, %c0_79, %c0_80], %268 {strides = array<i32>} : memref<1x8x32xf32, #tpu.memory_space<vmem>>, vector<1x8x32xf32>,
    return
  }
  func.func @transform_0(%arg0: i32) -> (i32, i32, i32) {
    %c0_i32 = arith.constant 0 : i32
    %c0_i32_0 = arith.constant 0 : i32
    %c0_i32_1 = arith.constant 0 : i32
    return %arg0, %c0_i32, %c0_i32_0 : i32, i32, i32
  }
  func.func @transform_1(%arg0: i32) -> (i32, i32, i32) {
    %c0_i32 = arith.constant 0 : i32
    %c0_i32_0 = arith.constant 0 : i32
    %c0_i32_1 = arith.constant 0 : i32
    return %arg0, %c0_i32, %c0_i32_0 : i32, i32, i32
  }
  func.func @transform_2(%arg0: i32) -> (i32, i32, i32) {
    %c0_i32 = arith.constant 0 : i32
    %c0_i32_0 = arith.constant 0 : i32
    %c0_i32_1 = arith.constant 0 : i32
    return %arg0, %c0_i32, %c0_i32_0 : i32, i32, i32
  }
  func.func @transform_3(%arg0: i32) -> (i32, i32) {
    %c0_i32 = arith.constant 0 : i32
    %c0_i32_0 = arith.constant 0 : i32
    %c0_i32_1 = arith.constant 0 : i32
    return %c0_i32, %c0_i32_0 : i32, i32
  }
  func.func @transform_4(%arg0: i32) -> (i32, i32) {
    %c0_i32 = arith.constant 0 : i32
    %c0_i32_0 = arith.constant 0 : i32
    %c0_i32_1 = arith.constant 0 : i32
    return %c0_i32, %c0_i32_0 : i32, i32
  }
  func.func @transform_5(%arg0: i32) -> (i32, i32) {
    %c0_i32 = arith.constant 0 : i32
    %c0_i32_0 = arith.constant 0 : i32
    %c0_i32_1 = arith.constant 0 : i32
    return %c0_i32, %c0_i32_0 : i32, i32
  }
  func.func @transform_6(%arg0: i32) -> (i32, i32) {
    %c0_i32 = arith.constant 0 : i32
    %c0_i32_0 = arith.constant 0 : i32
    %c0_i32_1 = arith.constant 0 : i32
    return %c0_i32, %c0_i32_0 : i32, i32
  }
  func.func @transform_7(%arg0: i32) -> (i32, i32, i32) {
    %c0_i32 = arith.constant 0 : i32
    %c0_i32_0 = arith.constant 0 : i32
    %c0_i32_1 = arith.constant 0 : i32
    return %arg0, %c0_i32, %c0_i32_0 : i32, i32, i32
  }
}

</mosaic_0001>

<bundles_post_ra>
// kernel: tpu_custom_call.1
= control target key start
LH: loop header
LB: loop body
LE: loop exit
PB: predicated region body
PF: predicated region fallthrough
CT: control target
= control target key end

     0   :  { %s3912_s0 = inlined_call_operand.hbm [shape: f32[2,8,32], index: 0, kind: input, shape index: {}]   ;;  %s3913_s1 = inlined_call_operand.hbm [shape: f32[2,16,32], index: 1, kind: input, shape index: {}]   ;;  %s3914_s2 = inlined_call_operand.vmem [shape: f32[2,1,16], index: 2, kind: input, shape index: {}]   ;;  %s3915_s3 = inlined_call_operand.vmem [shape: f32[32,320], index: 3, kind: input, shape index: {}]   ;;  %s3916_s4 = inlined_call_operand.vmem [shape: f32[64,32], index: 4, kind: input, shape index: {}]   ;;  %s3917_s5 = inlined_call_operand.hbm [shape: f32[15,32], index: 5, kind: input, shape index: {}]   ;;  %s3918_s6 = inlined_call_operand.vmem [shape: f32[1,64], index: 6, kind: input, shape index: {}]   ;;  %s3919_s7 = inlined_call_operand.hbm [shape: f32[2,8,32], index: 7, kind: output, shape index: {}]  }
   0x1   :  { %3927 = sst [smem:[#allocation14_spill]] %s3917_s5 }
   0x2   :  { %12 = vsyncpa [#allocation3], 0 }
   0x3   :  { %14 = vsyncpa [#allocation3 + $0x1], 0 }
   0x4   :  { %15 = vsyncpa [#allocation6], 0 }
   0x5   :  { %17 = vsyncpa [#allocation6 + $0x1], 0 }
   0x6   :  { %18 = vsyncpa [#allocation4], 0 }
   0x7   :  { %20 = vsyncpa [#allocation4 + $0x1], 0  ;;  %s3270_s24 = smov 0   ;;  %s3272_s25 = smov 0  }
   0x8   :  { %s3274_s26 = smov 0   ;;  %s3276_s27 = smov 0  }
   0x9 LB: > { %s3291_s28 = sadd.s32 4294967295, %s3205_s27   ;;  %s2614_s29 = sadd.s32 4294967294, %s3205_s27   ;;  %s3205_s27 = sphi %s3276_s27, %s3951_s27   ;;  %s3201_s26 = sphi %s3274_s26, %s3950_s26   ;;  %s3197_s25 = sphi %s3272_s25, %s3949_s25   ;;  %s3193_s24 = sphi %s3270_s24, %s3948_s24  }
   0xa   : > { %p46_p0 = scmp.ne.s32.totalorder %s3197_s25, %s3193_s24  ;;  %p3922_p1 = scmp.eq.s32.totalorder %s3291_s28, 0 }
   0xb   : > { %p212_p3 = scmp.eq.s32.totalorder %s2614_s29, 1  ;;  %p2615_p5 = scmp.ge.s32.totalorder %s3205_s27, 1 }
   0xc   : > { %p3300_p4 = por %p3922_p1, %p46_p0  ;;  %p219_p7 = scmp.lt.s32.totalorder %s3205_s27, 3 }
   0xd   : > { %p3305_p6 = por %p212_p3, %p46_p0  ;;  %s3207_s10 = smov [#allocation7]  }
   0xe   : > { %s3928_s30 = scalar_select %p3300_p4, 1, 0 }
   0xf   : > { %s3929_s8 = scalar_select %p3305_p6, 1, 0 }
  0x10   : > { %p3310_p8 = pnand %p2615_p5, %p219_p7  ;;  %s237_s11 = sshll.u32 %s3207_s10, 4  ;;  %s238_s11 = int_to_ptr.vmem [resolvable:$true] %s237_s11 }
  0x11   : > { %s3324_s13 = sadd.s32 1, %s3205_s27   ;;  %s33_s14 = sadd.s32 1, %s3201_s26 }
  0x12   : > { %s3930_s9 = scalar_select %p3310_p8, 1, 0 }
  0x13   : > { %p2942_p9 = pneg %p3310_p8  ;;  %s30_s15 = ssub.s32 %s3205_s27, %s3324_s13 }
  0x14   : > { %s3062_s16 = scalar_lea.vmem %s238_s11, 256  ;;  %p3070_p5 = scmp.lt.s32.totalorder %s238_s11, %s238_s11 }
  0x15   : > { %p3319_p11 = pnand %p2942_p9, %p3922_p1  ;;  %p3063_p13 = scmp.ne.s32.totalorder %s238_s11, %s3062_s16 }
  0x16   : > { %p3071_p7 = scmp.lt.s32.totalorder %s3062_s16, %s3062_s16 }
  0x17   : > { %p3053_p12 = pneg %p3319_p11 }
  0x18   : > { %p3072_p10 = por %p3071_p7, %p3070_p5 }
  0x19   : > { %p3065_p0 = pnand %p3063_p13, %p3053_p12 }
  0x1b   : > { %p3066_p3 = pneg %p3065_p0 }
  0x1d   : > { %p3073_p2 = pnand %p3072_p10, %p3066_p3 }
  0x1f   : > { %3076 = shalt.err (!%p3073_p2)
}
  0x20   : > { %s3920_s17 = smov 128   ;;  %s3921_s18 = smov 8  }
  0x21   : > { %s3932_s5 = sld [smem:[#allocation14_spill]]  ;;  %p31_p2 = scmp.eq.s32.totalorder %s30_s15, 0 }
  0x22   : > { %p40_p9 = scmp.ne.s32.totalorder %s3201_s26, %s3197_s25  ;;  %p41_p10 = scmp.eq.s32.totalorder %s3205_s27, 0 }
  0x23   : > { %p2958_p12 = scmp.lt.s32.totalorder %s3205_s27, 2  ;;  %p3934_p0 = scmp.eq.s32.totalorder %s3291_s28, 1 }
  0x24   : > { %s3344_s21 = scalar_select %p31_p2, %s3201_s26, %s33_s14  }
  0x25   : > { %p42_p13 = por %p41_p10, %p40_p9  ;;  %p3348_p3 = por %p3934_p0, %p40_p9 }
  0x26   : > { %3933 = sst [smem:[#allocation13_spill]] %s3344_s21  ;;  %s3353_s23 = sand.u32 1, %s3201_s26  }
  0x27   : > { %2945 = dma.hbm_to_vmem [thread:$0]  (!%p3319_p11), %s3932_s5, 256, %s238_s11, [#allocation6], %s3920_s17, %s3920_s17, %s3921_s18  }
  0x28   : > { %s3935_s22 = scalar_select %p3348_p3, 1, 0 }
  0x29   : > { %s2619_s29 = sshll.u32 %s3205_s27, 7  ;;  %s2618_s10 = sshll.u32 %s3353_s23, 3 }
  0x2a   : > { %s3360_s15 = scalar_lea.hbm %s3912_s0, %s2619_s29  ;;  %s258_s14 = scalar_lea.vmem [#allocation2], %s2618_s10 }
  0x2b   : > { %s265_s16 = sshll.u32 %s258_s14, 4  ;;  %p3362_p11 = pnand %p2958_p12, %p42_p13  ;;  %s266_s16 = int_to_ptr.vmem [resolvable:$true] %s265_s16 }
  0x2c   : > { %s2620_s20 = sshll.u32 %s3353_s23, 4  ;;  %s255_s17 = scalar_lea.sflag [#allocation3], %s3353_s23 }
  0x2d   : > { %s3077_s18 = scalar_lea.hbm %s3360_s15, 128  ;;  %p3079_p7 = pneg %p3362_p11 }
  0x2e   : > { %p3078_p5 = scmp.ne.s32.totalorder %s3360_s15, %s3077_s18  ;;  %s3082_s11 = scalar_lea.hbm %s3912_s0, 256 }
  0x2f   : > { %p3083_p10 = scmp.lt.s32.totalorder %s3360_s15, %s3912_s0  ;;  %p3084_p12 = scmp.lt.s32.totalorder %s3082_s11, %s3077_s18 }
  0x30   : > { %p3080_p2 = pnand %p3079_p7, %p3078_p5 }
  0x31   : > { %p3085_p13 = por %p3084_p12, %p3083_p10 }
  0x32   : > { %p3081_p9 = pneg %p3080_p2 }
  0x34   : > { %p3086_p0 = pnand %p3085_p13, %p3081_p9 }
  0x36   : > { %3089 = shalt.err (!%p3086_p0)
}
  0x37   : > { %s3090_s23 = scalar_lea.vmem %s266_s16, 128  ;;  %s3210_s5 = smov [#allocation2]  }
  0x38   : > { %p3091_p1 = scmp.ne.s32.totalorder %s266_s16, %s3090_s23  ;;  %s3095_s21 = sshll.u32 %s3210_s5, 4  ;;  %s3096_s21 = int_to_ptr.vmem [resolvable:$false] %s3095_s21 }
  0x39   : > { %s3097_s29 = scalar_lea.vmem %s3096_s21, 256  ;;  %p3098_p2 = scmp.lt.s32.totalorder %s266_s16, %s3096_s21 }
  0x3a   : > { %p3093_p6 = pnand %p3091_p1, %p3079_p7  ;;  %p3099_p3 = scmp.lt.s32.totalorder %s3097_s29, %s3090_s23 }
  0x3c   : > { %p3094_p5 = pneg %p3093_p6  ;;  %p3100_p4 = por %p3099_p3, %p3098_p2 }
  0x3e   : > { %p3101_p8 = pnand %p3100_p4, %p3094_p5 }
  0x40   : > { %3104 = shalt.err (!%p3101_p8)
}
  0x41   : > { %2949 = dma.hbm_to_vmem [thread:$0]  (!%p3362_p11), %s3360_s15, 128, %s266_s16, %s255_s17  }
  0x42   : > { %s276_s18 = scalar_lea.vmem [#allocation5], %s2620_s20  ;;  %s272_s11 = sand.u32 1, %s3205_s27  }
  0x43   : > { %s283_s10 = sshll.u32 %s276_s18, 4  ;;  %s2670_s5 = sshll.u32 %s3205_s27, 8  ;;  %s3389_s10 = int_to_ptr.vmem [resolvable:$true] %s283_s10 }
  0x44   : > { %s3395_s21 = scalar_lea.hbm %s3913_s1, %s2670_s5  ;;  %s273_s23 = scalar_lea.sflag [#allocation6], %s272_s11 }
  0x45   : > { %s3105_s29 = scalar_lea.hbm %s3395_s21, 256  ;;  %s3110_s16 = scalar_lea.hbm %s3913_s1, 512 }
  0x46   : > { %p3106_p1 = scmp.ne.s32.totalorder %s3395_s21, %s3105_s29  ;;  %p3111_p8 = scmp.lt.s32.totalorder %s3395_s21, %s3913_s1 }
  0x47   : > { %p3112_p3 = scmp.lt.s32.totalorder %s3110_s16, %s3105_s29 }
  0x48   : > { %p3108_p4 = pnand %p3106_p1, %p3079_p7 }
  0x49   : > { %p3113_p9 = por %p3112_p3, %p3111_p8 }
  0x4a   : > { %p3109_p6 = pneg %p3108_p4 }
  0x4c   : > { %p3114_p10 = pnand %p3113_p9, %p3109_p6 }
  0x4e   : > { %3117 = shalt.err (!%p3114_p10)
}
  0x4f   : > { %s3118_s11 = scalar_lea.vmem %s3389_s10, 256  ;;  %s3211_s5 = smov [#allocation5]  }
  0x50   : > { %p3119_p12 = scmp.ne.s32.totalorder %s3389_s10, %s3118_s11  ;;  %s3123_s12 = sshll.u32 %s3211_s5, 4  ;;  %s3124_s12 = int_to_ptr.vmem [resolvable:$false] %s3123_s12 }
  0x51   : > { %s3125_s14 = scalar_lea.vmem %s3124_s12, 512  ;;  %p3126_p5 = scmp.lt.s32.totalorder %s3389_s10, %s3124_s12 }
  0x52   : > { %p3121_p13 = pnand %p3119_p12, %p3079_p7  ;;  %p3127_p2 = scmp.lt.s32.totalorder %s3125_s14, %s3118_s11 }
  0x54   : > { %p3122_p0 = pneg %p3121_p13  ;;  %p3128_p1 = por %p3127_p2, %p3126_p5 }
  0x56   : > { %p3129_p4 = pnand %p3128_p1, %p3122_p0 }
  0x58   : > { %3132 = shalt.err (!%p3129_p4)
}
  0x59   : > { %s3937_s29 = smov 8   ;;  %s3938_s17 = smov 128  }
  0x5a   : > { %2952 = dma.hbm_to_vmem [thread:$0]  (!%p3362_p11), %s3395_s21, 256, %s3389_s10, %s273_s23, %s3938_s17, %s3938_s17, %s3937_s29  }
  0x5b   : > { %p3939_p7 = scmp.ne.s32.totalorder %s3930_s9, 0 }
  0x5c   : > { %s3425_s15 = sand.u32 (!%p3939_p7), 1, %s3197_s25   ;;  %p3940_p6 = scmp.ne.s32.totalorder (!%p3939_p7), %s3928_s30, 0 }
  0x5d   : > { %301 = sbr.rel (%p3939_p7) target bundleno = 5174 (0x1436), region = 48  ;;  %s3926_s16 = sshll.u32 (!%p3939_p7), %s3425_s15, 3 }
  0x5e   : > { %s304_s20 = scalar_lea.sflag (!%p3939_p7), [#allocation3], %s3425_s15  ;;  %s3431_s19 = scalar_lea.vmem (!%p3939_p7), [#allocation2], %s3926_s16 }
  0x62   : > { %3176 = dma.done.wait (%p3940_p6), %s304_s20, 128  }
  0x63   : > { %3178 = vsyncadd (%p3940_p6), %s304_s20, 4294967168  ;;  %s312_s9 = sand.u32 1, %s3291_s28   ;;  %s2625_s10 = sshll.u32 %s3425_s15, 4 }
  0x64   : > { %s313_s21 = scalar_lea.sflag [#allocation6], %s312_s9  ;;  %s3439_s23 = scalar_lea.vmem [#allocation5], %s2625_s10 }
  0x65   : > { %3180 = dma.done.wait (%p3940_p6), %s313_s21, 256  }
  0x66   : > { %3182 = vsyncadd (%p3940_p6), %s313_s21, 4294967040  ;;  %p3941_p11 = scmp.eq.s32.totalorder %s3291_s28, 0 }
  0x68   : > { %3184 = dma.done.wait (%p3941_p11), [#allocation6], 256   ;;  %p3942_p8 = pmov %p3941_p11 }
  0x69   : > { %v454_v0 = vlaneseq  ;;  %v3212_v1 = vmov 0.0   ;;  %vm3213_vm0 = vmmov 0   ;;  %v3461_v4 = vld [vmem:[%s3915_s3 + $0x48] sm:$0xff]  ;;  %v3466_v5 = vld [vmem:[%s3915_s3 + $0x30] sm:$0xff]  ;;  %v3475_v7 = vld [vmem:[%s3915_s3 + $0x18] sm:$0xff]  ;;  %s3214_s20 = smov 32  }
  0x6a   : > { %3186 = vsyncadd (%p3942_p8), [#allocation6], 4294967040  ;;  %2751 = vmatprep.subr.mxu1 %v3212_v1  ;;  %2759 = vmatprep.mubr.msk.f32.mxu1 %vm3213_vm0, %v3212_v1  ;;  %v3469_v6 = vld [vmem:[#allocation7] sm:$0xff]  ;;  %v3485_v9 = vld [vmem:[%s3915_s3] sm:$0xff]  ;;  %vm380_vm1 = vcmask 261120   ;;  %s3216_s9 = smov 96  }
  0x6b   : > { %v3452_v2 = vshrl.u32 %v454_v0, 7  ;;  %2772 = vmatprep.subr.mxu0 %v3212_v1  ;;  %2774 = vmatprep.mubr.msk.f32.mxu0 %vm3213_vm0, %v3212_v1  ;;  %v3490_v10 = vld [vmem:[%s3431_s19] sm:$0xff]  ;;  %s3215_s19 = smov 88   ;;  %s3217_s10 = smov 80   ;;  %vm480_vm2 = vcmask 64512   ;;  %vm1156_vm3 = vcmask 130048  }
  0x6c   : > { %2752 = vmatpush3.msra.mxu1 %v3461_v4  ;;  %s3218_s21 = smov 120   ;;  %s3219_s30 = smov 72   ;;  %vm1158_vm4 = vcmask 195584   ;;  %vm2390_vm5 = vcmask 523264  }
  0x6d   : > { %v461_v3 = vsub.s32 1, %v3452_v2  ;;  %2753 = vmatprep.subr.mxu1 %v3212_v1  ;;  %v456_v11 = vsub.s32 0, %v3452_v2  ;;  %s3220_s18 = smov 112   ;;  %s3221_s11 = smov 104   ;;  %v470_v41 = vsub.s32 2, %v3452_v2 }
  0x6e   : > { %2754 = vmatpush3.msra.mxu1 %v3466_v5  ;;  %s3222_s5 = smov 64   ;;  %s3223_s12 = smov 48  }
  0x6f   : > { %v462_v8 = vrot.slane %v3469_v6, %v461_v3  ;;  %2755 = vmatprep.subr.mxu1 %v3212_v1  ;;  %v457_v14 = vrot.slane %v3469_v6, %v456_v11  ;;  %v471_v42 = vrot.slane %v3469_v6, %v470_v41  ;;  %s3224_s14 = smov 40   ;;  %s3225_s29 = smov 56  }
  0x70   : > { %2756 = vmatpush3.msra.mxu1 %v3475_v7  ;;  %s3228_s16 = smov 24   ;;  %p359_p3 = scmp.lt.s32.totalorder %s3291_s28, 1 }
  0x71   : > { %464 = vrot.lane.b32.xlu0 %v462_v8, %s3214_s20  ;;  %2757 = vmatprep.subr.mxu1 %v3212_v1  ;;  %v3552_v8 = vld [vmem:[%s3915_s3 + $0x50] sm:$0xff]  ;;  %p3944_p10 = scmp.ne.s32.totalorder %s3935_s22, 0 }
  0x72   : > { %2758 = vmatpush3.msra.mxu1 %v3485_v9 }
  0x73   : > { %2760 = vmatmul.mubr.msk.f32.vlgmr.msra.gmra.mxu1 %vm380_vm1, %v3490_v10  ;;  %2762 = vmatprep.subr.mxu1 %v3212_v1 }
  0x74   : > { %2764 = vmatprep.mubr.msk.f32.mxu1 %vm3213_vm0, %v3212_v1 }
  0xe3   : > { %v465_v12 = vpop.permute.xlu0 %464 }
 0x133   : > { %v3500_v13 = vpop.f32.mrf.mxu1 }
 0x134   : > { %v467_v15 = vadd.f32 %v465_v12, %v3500_v13  ;;  %v458_v17 = vadd.f32 %v457_v14, %v3500_v13 }
 0x135   : > { %v2761_v16 = vpop.f32.mrf.mxu1 }
 0x136   : > { %647 = vrot.lane.b32.xlu1 %v467_v15, %s3215_s19  ;;  %478 = vrot.lane.b32.xlu0 %v467_v15, %s3216_s9 }
 0x13a   : > { %813 = vrot.lane.b32.xlu0 %v467_v15, %s3217_s10  ;;  %645 = vrot.lane.b32.xlu1 %v458_v17, %s3218_s21 }
 0x13e   : > { %979 = vrot.lane.b32.xlu0 %v467_v15, %s3219_s30  ;;  %811 = vrot.lane.b32.xlu1 %v458_v17, %s3220_s18 }
 0x142   : > { %977 = vrot.lane.b32.xlu1 %v458_v17, %s3221_s11 }
 0x1a8   : > { %v648_v18 = vpop.permute.xlu1 %647  ;;  %v479_v19 = vpop.permute.xlu0 %478 }
 0x1a9   : > { %2763 = vmatpush3.xpose.msk.msra.mxu1 %vm480_vm2, %v479_v19  ;;  %2773 = vmatpush3.xpose.msk.msra.mxu0 %vm480_vm2, %v648_v18 }
 0x1aa   : > { %2782 = vmatprep.subr.mxu0 %v3212_v1  ;;  %2767 = vmatprep.subr.mxu1 %v3212_v1 }
 0x1ac   : > { %v814_v20 = vpop.permute.xlu0 %813  ;;  %v646_v21 = vpop.permute.xlu1 %645  ;;  %2765 = vmatmul.mubr.msk.f32.vlgmr.msra.gmra.mxu1 %vm480_vm2, %v458_v17 }
 0x1ad   : > { %2775 = vmatmul.mubr.msk.f32.vlgmr.msra.gmra.mxu0 %vm480_vm2, %v646_v21  ;;  %2769 = vmatprep.mubr.msk.f32.mxu1 %vm3213_vm0, %v3212_v1 }
 0x1ae   : > { %2783 = vmatpush3.xpose.msk.msra.mxu0 %vm480_vm2, %v814_v20  ;;  %2784 = vmatprep.mubr.msk.f32.mxu0 %vm3213_vm0, %v3212_v1 }
 0x1af   : > { %2792 = vmatprep.subr.mxu0 %v3212_v1 }
 0x1b0   : > { %v980_v22 = vpop.permute.xlu0 %979  ;;  %v812_v23 = vpop.permute.xlu1 %811 }
 0x1b1   : > { %2785 = vmatmul.mubr.msk.f32.vlgmr.msra.gmra.mxu0 %vm480_vm2, %v812_v23 }
 0x1b2   : > { %2793 = vmatpush3.xpose.msk.msra.mxu0 %vm480_vm2, %v980_v22  ;;  %2794 = vmatprep.mubr.msk.f32.mxu0 %vm3213_vm0, %v3212_v1 }
 0x1b3   : > { %2802 = vmatprep.subr.mxu0 %v3212_v1 }
 0x1b4   : > { %v978_v24 = vpop.permute.xlu1 %977 }
 0x1b5   : > { %2795 = vmatmul.mubr.msk.f32.vlgmr.msra.gmra.mxu0 %vm480_vm2, %v978_v24 }
 0x1b6   : > { %2810 = vmatprep.mubr.msk.f32.mxu0 %vm3213_vm0, %v3212_v1 }
 0x26c   : > { %v552_v25 = vpop.f32.mrf.mxu1 }
 0x26d   : > { %v556_v26 = vmul.f32 0.35355338, %v552_v25  ;;  %v719_v27 = vpop.f32.mrf.mxu0 }
 0x26e   : > { %v723_v28 = vmul.f32 0.35355338, %v719_v27  ;;  %v2766_v29 = vpop.f32.mrf.mxu1 }
 0x26f   : > { %v2776_v30 = vpop.f32.mrf.mxu0  ;;  %v557_v31 = vsel %vm480_vm2, %v556_v26, -inf  ;;  %v3582_v29 = vld [vmem:[%s3915_s3 + $0x20] sm:$0xff] }
 0x270   : > { %558 = vmax.xlane.f32.xlu0 %v557_v31  ;;  %v724_v32 = vsel %vm480_vm2, %v723_v28, -inf }
 0x271   : > { %725 = vmax.xlane.f32.xlu1 %v724_v32  ;;  %v885_v33 = vpop.f32.mrf.mxu0 }
 0x272   : > { %v889_v34 = vmul.f32 0.35355338, %v885_v33 }
 0x273   : > { %v2786_v35 = vpop.f32.mrf.mxu0 }
 0x274   : > { %v890_v36 = vsel %vm480_vm2, %v889_v34, -inf }
 0x275   : > { %v1051_v37 = vpop.f32.mrf.mxu0  ;;  %891 = vmax.xlane.f32.xlu0 %v890_v36 }
 0x276   : > { %v1055_v38 = vmul.f32 0.35355338, %v1051_v37 }
 0x277   : > { %v2796_v39 = vpop.f32.mrf.mxu0 }
 0x278   : > { %v1056_v40 = vsel %vm480_vm2, %v1055_v38, -inf  ;;  %v3594_v39 = vld [vmem:[%s3915_s3 + $0x8] sm:$0xff] }
 0x279   : > { %1057 = vmax.xlane.f32.xlu0 %v1056_v40 }
 0x282   : > { %473 = vrot.lane.b32.xlu1 %v471_v42, %s3222_s5 }
 0x2f9   : > { %v559_v43 = vpop.xlane.xlu0 %558 }
 0x2fa   : > { %v560_v44 = vsub.f32 %v556_v26, %v559_v43  ;;  %v726_v45 = vpop.xlane.xlu1 %725 }
 0x2fb   : > { %v727_v46 = vsub.f32 %v723_v28, %v726_v45  ;;  %v3575_v28 = vld [vmem:[%s3915_s3 + $0x38] sm:$0xff] }
 0x2fc   : > { %v561_v47 = vmul.f32 1.442695, %v560_v44 }
 0x2fd   : > { %v728_v48 = vmul.f32 1.442695, %v727_v46 }
 0x2fe   : > { %3013 = vpow2.f32 %v561_v47  ;;  %v474_v49 = vpop.permute.xlu1 %473  ;;  %v892_v50 = vpop.xlane.xlu0 %891 }
 0x2ff   : > { %v476_v51 = vadd.f32 %v474_v49, %v3500_v13  ;;  %v893_v52 = vsub.f32 %v889_v34, %v892_v50  ;;  %3015 = vpow2.f32 %v728_v48 }
 0x301   : > { %v894_v53 = vmul.f32 1.442695, %v893_v52  ;;  %569 = vrot.lane.b32.xlu1 %v476_v51, %s3222_s5 }
 0x302   : > { %v1058_v54 = vpop.xlane.xlu0 %1057 }
 0x303   : > { %v1059_v55 = vsub.f32 %v1055_v38, %v1058_v54  ;;  %3017 = vpow2.f32 %v894_v53 }
 0x305   : > { %v1060_v56 = vmul.f32 1.442695, %v1059_v55  ;;  %901 = vrot.lane.b32.xlu1 %v476_v51, %s3223_s12 }
 0x307   : > { %3019 = vpow2.f32 %v1060_v56 }
 0x309   : > { %1067 = vrot.lane.b32.xlu1 %v476_v51, %s3224_s14  ;;  %s3226_s14 = smov 8  }
 0x30b   : > { %v3014_v57 = vpop.eup %3013 }
 0x30c   : > { %v563_v58 = vsel %vm480_vm2, %v3014_v57, 0.0  ;;  %v3016_v59 = vpop.eup %3015 }
 0x30d   : > { %564 = vadd.xlane.f32.xlu0 %v563_v58  ;;  %v730_v60 = vsel %vm480_vm2, %v3016_v59, 0.0  ;;  %1174 = vrot.lane.b32.xlu1 %v3552_v8, %s3222_s5 }
 0x310   : > { %v3018_v61 = vpop.eup %3017 }
 0x311   : > { %731 = vadd.xlane.f32.xlu0 %v730_v60  ;;  %v896_v62 = vsel %vm480_vm2, %v3018_v61, 0.0  ;;  %1172 = vrot.lane.b32.xlu1 %v3575_v28, %s3222_s5 }
 0x314   : > { %v3020_v63 = vpop.eup %3019 }
 0x315   : > { %897 = vadd.xlane.f32.xlu0 %v896_v62  ;;  %v1062_v0 = vsel %vm480_vm2, %v3020_v63, 0.0 }
 0x319   : > { %1063 = vadd.xlane.f32.xlu0 %v1062_v0 }
 0x32f   : > { %735 = vrot.lane.b32.xlu0 %v476_v51, %s3225_s29  ;;  %s3227_s29 = smov 16  }
 0x333   : > { %1170 = vrot.lane.b32.xlu0 %v3582_v29, %s3222_s5 }
 0x373   : > { %v570_v12 = vpop.permute.xlu1 %569 }
 0x374   : > { %2768 = vmatpush3.msra.mxu1 %v570_v12 }
 0x375   : > { %2777 = vmatprep.subr.mxu1 %v3212_v1 }
 0x377   : > { %v902_v21 = vpop.permute.xlu1 %901 }
 0x37b   : > { %v1068_v25 = vpop.permute.xlu1 %1067 }
 0x37f   : > { %v1175_v30 = vpop.permute.xlu1 %1174 }
 0x380   : > { %2803 = vmatpush3.msra.mxu0 %v1175_v30 }
 0x381   : > { %2804 = vmatprep.subr.mxu0 %v3212_v1 }
 0x383   : > { %v1173_v31 = vpop.permute.xlu1 %1172 }
 0x384   : > { %2805 = vmatpush3.msra.mxu0 %v1173_v31 }
 0x385   : > { %2806 = vmatprep.subr.mxu0 %v3212_v1 }
 0x396   : > { %v565_v13 = vpop.xlane.xlu0 %564 }
 0x397   : > { %3021 = vrcp.f32 %v565_v13 }
 0x39a   : > { %v732_v14 = vpop.xlane.xlu0 %731 }
 0x39b   : > { %3023 = vrcp.f32 %v732_v14 }
 0x39e   : > { %v898_v15 = vpop.xlane.xlu0 %897 }
 0x39f   : > { %3025 = vrcp.f32 %v898_v15 }
 0x3a2   : > { %v1064_v16 = vpop.xlane.xlu0 %1063 }
 0x3a3   : > { %3027 = vrcp.f32 %v1064_v16 }
 0x3a4   : > { %v3022_v17 = vpop.eup %3021 }
 0x3a5   : > { %v567_v18 = vmul.f32 %v3022_v17, %v3014_v57 }
 0x3a6   : > { %v736_v19 = vpop.permute.xlu0 %735 }
 0x3a7   : > { %2770 = vmatmul.mubr.msk.f32.vlgmr.msra.gmra.mxu1 %vm480_vm2, %v567_v18 }
 0x3a8   : > { %v3024_v20 = vpop.eup %3023  ;;  %2778 = vmatpush3.msra.mxu1 %v736_v19  ;;  %2779 = vmatprep.mubr.msk.f32.mxu1 %vm3213_vm0, %v3212_v1 }
 0x3a9   : > { %2787 = vmatprep.subr.mxu1 %v3212_v1  ;;  %v734_v22 = vmul.f32 %v3024_v20, %v3016_v59  ;;  %v1454_v20 = vsub.s32 5, %v3452_v2 }
 0x3aa   : > { %v1171_v32 = vpop.permute.xlu0 %1170 }
 0x3ab   : > { %2780 = vmatmul.mubr.msk.f32.vlgmr.msra.gmra.mxu1 %vm480_vm2, %v734_v22  ;;  %2807 = vmatpush3.msra.mxu0 %v1171_v32 }
 0x3ac   : > { %v3026_v23 = vpop.eup %3025  ;;  %2788 = vmatpush3.msra.mxu1 %v902_v21  ;;  %2789 = vmatprep.mubr.msk.f32.mxu1 %vm3213_vm0, %v3212_v1 }
 0x3ad   : > { %2797 = vmatprep.subr.mxu1 %v3212_v1  ;;  %v900_v24 = vmul.f32 %v3026_v23, %v3018_v61  ;;  %2808 = vmatprep.subr.mxu0 %v3212_v1 }
 0x3af   : > { %2790 = vmatmul.mubr.msk.f32.vlgmr.msra.gmra.mxu1 %vm480_vm2, %v900_v24  ;;  %v1280_v24 = vsub.s32 4, %v3452_v2 }
 0x3b0   : > { %v3028_v26 = vpop.eup %3027  ;;  %2798 = vmatpush3.msra.mxu1 %v1068_v25  ;;  %2799 = vmatprep.mubr.msk.f32.mxu1 %vm3213_vm0, %v3212_v1 }
 0x3b1   : > { %v1066_v27 = vmul.f32 %v3028_v26, %v3020_v63  ;;  %2813 = vmatprep.subr.mxu1 %v3212_v1  ;;  %v1281_v25 = vrot.slane %v3469_v6, %v1280_v24 }
 0x3b3   : > { %2800 = vmatmul.mubr.msk.f32.vlgmr.msra.gmra.mxu1 %vm480_vm2, %v1066_v27 }
 0x3b4   : > { %2821 = vmatprep.mubr.msk.f32.mxu1 %vm3213_vm0, %v3212_v1 }
 0x467   : > { %v641_v33 = vpop.f32.mrf.mxu1 }
 0x469   : > { %v2771_v34 = vpop.f32.mrf.mxu1 }
 0x46b   : > { %v807_v35 = vpop.f32.mrf.mxu1 }
 0x46c   : > { %1144 = vrot.lane.b32.xlu1 %v807_v35, %s3226_s14 }
 0x46d   : > { %v2781_v36 = vpop.f32.mrf.mxu1 }
 0x46f   : > { %v973_v37 = vpop.f32.mrf.mxu1 }
 0x470   : > { %1148 = vrot.lane.b32.xlu1 %v973_v37, %s3227_s29 }
 0x471   : > { %v2791_v38 = vpop.f32.mrf.mxu1 }
 0x473   : > { %v1139_v40 = vpop.f32.mrf.mxu1 }
 0x474   : > { %1168 = vrot.lane.b32.xlu1 %v3594_v39, %s3222_s5  ;;  %1152 = vrot.lane.b32.xlu0 %v1139_v40, %s3228_s16 }
 0x475   : > { %v2801_v42 = vpop.f32.mrf.mxu1 }
 0x478   : > { %1290 = vrot.lane.b32.xlu1 %v3466_v5, %s3214_s20  ;;  %v1162_v5 = vsub.s32 3, %v3452_v2 }
 0x47a   : > { %v1163_v50 = vrot.slane %v3469_v6, %v1162_v5 }
 0x4de   : > { %v1145_v43 = vpop.permute.xlu1 %1144 }
 0x4df   : > { %v1155_v45 = vsel %vm480_vm2, %v641_v33, %v1145_v43 }
 0x4e2   : > { %v1149_v44 = vpop.permute.xlu1 %1148 }
 0x4e3   : > { %v1157_v46 = vsel %vm1156_vm3, %v1155_v45, %v1149_v44 }
 0x4e6   : > { %v1169_v47 = vpop.permute.xlu1 %1168  ;;  %v1153_v48 = vpop.permute.xlu0 %1152 }
 0x4e7   : > { %v1159_v49 = vsel %vm1158_vm4, %v1157_v46, %v1153_v48  ;;  %2809 = vmatpush3.msra.mxu0 %v1169_v47  ;;  %v1460_v47 = vsub.s32 6, %v3452_v2 }
 0x4e8   : > { %2811 = vmatmul.mubr.msk.f32.vlgmr.msra.gmra.mxu0 %vm380_vm1, %v1159_v49  ;;  %2824 = vmatprep.subr.mxu0 %v3552_v8 }
 0x4e9   : > { %2825 = vmatpush3.msra.mxu0 %v3552_v8  ;;  %v1461_v48 = vrot.slane %v3469_v6, %v1460_v47 }
 0x4ea   : > { %2826 = vmatprep.subr.mxu0 %v3575_v28  ;;  %v1291_v60 = vpop.permute.xlu1 %1290 }
 0x4eb   : > { %2827 = vmatpush3.msra.mxu0 %v3575_v28 }
 0x4ec   : > { %2828 = vmatprep.subr.mxu0 %v3582_v29 }
 0x4ed   : > { %2829 = vmatpush3.msra.mxu0 %v3582_v29 }
 0x4ee   : > { %2830 = vmatprep.subr.mxu0 %v3594_v39 }
 0x4ef   : > { %2831 = vmatpush3.msra.mxu0 %v3594_v39 }
 0x4f0   : > { %2842 = vmatprep.subr.mxu0 %v3212_v1 }
 0x5a8   : > { %v1249_v51 = vpop.f32.mrf.mxu0 }
 0x5a9   : > { %v1250_v52 = vadd.f32 %v1249_v51, %v1163_v50 }
 0x5aa   : > { %v2812_v53 = vpop.f32.mrf.mxu0 }
 0x5ab   : > { %v1253_v54 = vadd.f32 %v1250_v52, %v3490_v10 }
 0x5ad   : > { %v1254_v55 = vsel %vm380_vm1, %v1253_v54, 0.0 }
 0x5ae   : > { %1255 = vadd.xlane.f32.xlu0 %v1254_v55 }
 0x5c4   : > { %1292 = vrot.lane.b32.xlu0 %v3461_v4, %s3214_s20  ;;  %v363_v4 = vld [vmem:[%s3439_s23] sm:$0xff] }
 0x5c5   : > { %2832 = vmatprep.mubr.msk.f32.mxu0 %vm380_vm1, %v363_v4 }
 0x5c8   : > { %1288 = vrot.lane.b32.xlu0 %v3475_v7, %s3214_s20  ;;  %v364_v7 = vld [vmem:[%s3439_s23 + $0x8] sm:$0xff]  ;;  %s360_s23 = scalar_select %p359_p3, %s3291_s28, 1 }
 0x5c9   : > { %2833 = vmatmul.mubr.msk.f32.vlgmr.msra.gmra.mxu0 %vm380_vm1, %v364_v7 }
 0x5ca   : > { %2846 = vmatprep.mubr.msk.f32.mxu0 %vm3213_vm0, %v3212_v1  ;;  %s361_s17 = scalar_lea.vmem %s3914_s2, %s360_s23  ;;  %s2667_s23 = sshll.u32 %s3291_s28, 7 }
 0x5cb   : > { %v3693_v35 = vld [vmem:[%s361_s17] ss:$0 sm:$0xff] }
 0x637   : > { %v1256_v56 = vpop.xlane.xlu0 %1255 }
 0x638   : > { %v1258_v57 = vmul.f32 0.03125, %v1256_v56 }
 0x63a   : > { %v1259_v58 = vsub.f32 %v1253_v54, %v1258_v57 }
 0x63b   : > { %v1293_v59 = vpop.permute.xlu0 %1292 }
 0x63c   : > { %v1260_v61 = vmul.f32 %v1259_v58, %v1259_v58  ;;  %2814 = vmatpush3.msra.mxu1 %v1293_v59 }
 0x63d   : > { %2815 = vmatprep.subr.mxu1 %v3212_v1 }
 0x63e   : > { %v1261_v10 = vsel %vm380_vm1, %v1260_v61, 0.0  ;;  %2816 = vmatpush3.msra.mxu1 %v1291_v60 }
 0x63f   : > { %1262 = vadd.xlane.f32.xlu1 %v1261_v10  ;;  %2817 = vmatprep.subr.mxu1 %v3212_v1  ;;  %v1289_v62 = vpop.permute.xlu0 %1288 }
 0x640   : > { %2818 = vmatpush3.msra.mxu1 %v1289_v62 }
 0x641   : > { %2819 = vmatprep.subr.mxu1 %v3212_v1 }
 0x650   : > { %1286 = vrot.lane.b32.xlu1 %v3485_v9, %s3214_s20  ;;  %v3637_v9 = vld [vmem:[#allocation7 + $0x8] sm:$0x7f] }
 0x651   : > { %v1271_v14 = vrot.slane %v3637_v9, %v461_v3  ;;  %v1276_v16 = vrot.slane %v3637_v9, %v470_v41  ;;  %v1455_v3 = vrot.slane %v3469_v6, %v1454_v20 }
 0x689   : > { %v2834_v21 = vpop.f32.mrf.mxu0 }
 0x68a   : > { %v3655_v22 = vadd.f32 %v2834_v21, %v1455_v3 }
 0x68b   : > { %v1443_v41 = vpop.f32.mrf.mxu0 }
 0x68c   : > { %1651 = vrot.lane.b32.xlu0 %v3655_v22, %s3218_s21  ;;  %v3661_v23 = vadd.f32 %v1455_v3, %v1443_v41 }
 0x68e   : > { %1649 = vrot.lane.b32.xlu1 %v3661_v23, %s3218_s21 }
 0x6c8   : > { %v1263_v63 = vpop.xlane.xlu1 %1262 }
 0x6c9   : > { %v1264_v0 = vmul.f32 0.03125, %v1263_v63 }
 0x6cb   : > { %v1265_v12 = vadd.f32 1e-05, %v1264_v0 }
 0x6cc   : > { %v1287_v13 = vpop.permute.xlu1 %1286 }
 0x6cd   : > { %3029 = vrsqrt.f32 %v1265_v12  ;;  %2820 = vmatpush3.msra.mxu1 %v1287_v13 }
 0x6ce   : > { %2835 = vmatprep.subr.mxu1 %v3212_v1 }
 0x6da   : > { %v3030_v15 = vpop.eup %3029 }
 0x6db   : > { %v1267_v17 = vmul.f32 %v3030_v15, %v1259_v58 }
 0x6dd   : > { %v1272_v18 = vmul.f32 %v1271_v14, %v1267_v17 }
 0x6df   : > { %v3645_v19 = vadd.f32 %v1276_v16, %v1272_v18 }
 0x6e1   : > { %2822 = vmatmul.mubr.msk.f32.vlgmr.msra.gmra.mxu1 %vm380_vm1, %v3645_v19 }
 0x6e2   : > { %2839 = vmatprep.mubr.msk.f32.mxu1 %vm3213_vm0, %v3212_v1  ;;  %2836 = vmatpush3.xpose.msk.msra.mxu1 %vm480_vm2, %v3655_v22 }
 0x6e3   : > { %2837 = vmatprep.subr.mxu1 %v3212_v1 }
 0x6e6   : > { %2838 = vmatpush3.xpose.msk.msra.mxu1 %vm480_vm2, %v3661_v23 }
 0x6e7   : > { %2849 = vmatprep.subr.mxu1 %v3212_v1 }
 0x6fe   : > { %v1652_v30 = vpop.permute.xlu0 %1651 }
 0x700   : > { %v1650_v32 = vpop.permute.xlu1 %1649 }
 0x7a1   : > { %v1367_v26 = vpop.f32.mrf.mxu1 }
 0x7a2   : > { %v3673_v27 = vadd.f32 %v1367_v26, %v1281_v25 }
 0x7a3   : > { %v2823_v31 = vpop.f32.mrf.mxu1 }
 0x7a4   : > { %1647 = vrot.lane.b32.xlu0 %v3673_v27, %s3218_s21  ;;  %2840 = vmatmul.mubr.msk.f32.vlgmr.msra.gmra.mxu1 %vm480_vm2, %v3673_v27  ;;  %s3943_s21 = sshll.u32 %s3425_s15, 3 }
 0x7a5   : > { %2850 = vmatpush3.xpose.msk.msra.mxu1 %vm480_vm2, %v1652_v30  ;;  %2853 = vmatprep.mubr.msk.f32.mxu1 %vm3213_vm0, %v3212_v1  ;;  %s358_s5 = scalar_lea.vmem [#allocation8], %s3943_s21 }
 0x7a6   : > { %2851 = vmatprep.subr.mxu1 %v3212_v1  ;;  %s2503_s17 = sshll.u32 %s358_s5, 4  ;;  %s2504_s17 = int_to_ptr.vmem [resolvable:$true] %s2503_s17 }
 0x7a9   : > { %2852 = vmatpush3.xpose.msk.msra.mxu1 %vm480_vm2, %v1650_v32 }
 0x7aa   : > { %2870 = vmatprep.subr.mxu1 %v3212_v1 }
 0x816   : > { %v1648_v33 = vpop.permute.xlu0 %1647 }
 0x817   : > { %2854 = vmatmul.mubr.msk.f32.vlgmr.msra.gmra.mxu1 %vm480_vm2, %v1648_v33 }
 0x818   : > { %2874 = vmatprep.mubr.msk.f32.mxu1 %vm3213_vm0, %v3212_v1 }
 0x864   : > { %v1543_v34 = vpop.f32.mrf.mxu1 }
 0x865   : > { %v1547_v36 = vmul.f32 0.35355338, %v1543_v34 }
 0x866   : > { %v2841_v37 = vpop.f32.mrf.mxu1 }
 0x867   : > { %v1554_v38 = vadd.f32 %v3693_v35, %v1547_v36 }
 0x869   : > { %v1555_v40 = vsel %vm1156_vm3, %v1554_v38, -inf }
 0x86a   : > { %1556 = vmax.xlane.f32.xlu1 %v1555_v40 }
 0x8d7   : > { %v1725_v42 = vpop.f32.mrf.mxu1 }
 0x8d8   : > { %v1729_v43 = vmul.f32 0.35355338, %v1725_v42 }
 0x8d9   : > { %v2855_v44 = vpop.f32.mrf.mxu1 }
 0x8da   : > { %v1730_v45 = vadd.f32 %v3693_v35, %v1729_v43 }
 0x8dc   : > { %v1731_v46 = vsel %vm1156_vm3, %v1730_v45, -inf }
 0x8dd   : > { %1732 = vmax.xlane.f32.xlu0 %v1731_v46 }
 0x8f3   : > { %1463 = vrot.lane.b32.xlu0 %v1461_v48, %s3214_s20  ;;  %v1557_v53 = vpop.xlane.xlu1 %1556 }
 0x8f4   : > { %v1558_v54 = vsub.f32 %v1554_v38, %v1557_v53 }
 0x8f6   : > { %v1559_v55 = vmul.f32 1.442695, %v1558_v54 }
 0x8f8   : > { %3031 = vpow2.f32 %v1559_v55 }
 0x905   : > { %v3032_v58 = vpop.eup %3031 }
 0x906   : > { %v1561_v59 = vsel %vm1156_vm3, %v3032_v58, 0.0 }
 0x966   : > { %v1733_v49 = vpop.xlane.xlu0 %1732 }
 0x967   : > { %v1734_v56 = vsub.f32 %v1730_v45, %v1733_v49 }
 0x969   : > { %v1735_v57 = vmul.f32 1.442695, %v1734_v56 }
 0x96a   : > { %v1464_v50 = vpop.permute.xlu0 %1463 }
 0x96b   : > { %v3704_v51 = vadd.f32 %v1464_v50, %v1443_v41  ;;  %v3706_v52 = vadd.f32 %v2834_v21, %v1464_v50  ;;  %3033 = vpow2.f32 %v1735_v57 }
 0x96d   : > { %1570 = vrot.lane.b32.xlu1 %v3706_v52, %s3216_s9  ;;  %1568 = vrot.lane.b32.xlu0 %v3704_v51, %s3216_s9  ;;  %s2490_s9 = scalar_lea.sflag [#allocation4], %s3425_s15 }
 0x971   : > { %1742 = vrot.lane.b32.xlu1 %v3704_v51, %s3215_s19  ;;  %1744 = vrot.lane.b32.xlu0 %v3706_v52, %s3215_s19  ;;  %s2501_s19 = scalar_lea.hbm %s3919_s7, %s2667_s23 }
 0x975   : > { %1825 = vrot.lane.b32.xlu0 %v3655_v22, %s3220_s18 }
 0x978   : > { %v3034_v60 = vpop.eup %3033 }
 0x979   : > { %1821 = vrot.lane.b32.xlu0 %v3673_v27, %s3220_s18  ;;  %v1737_v61 = vsel %vm1156_vm3, %v3034_v60, 0.0 }
 0x995   : > { %1562 = vadd.xlane.f32.xlu1 %v1561_v59 }
 0x999   : > { %1738 = vadd.xlane.f32.xlu1 %v1737_v61 }
 0x9aa   : > { %1823 = vrot.lane.b32.xlu1 %v3661_v23, %s3220_s18 }
 0x9df   : > { %v1571_v10 = vpop.permute.xlu1 %1570  ;;  %v1569_v4 = vpop.permute.xlu0 %1568 }
 0x9e0   : > { %2843 = vmatpush3.msra.mxu0 %v1571_v10 }
 0x9e1   : > { %2844 = vmatprep.subr.mxu0 %v3212_v1 }
 0x9e2   : > { %2845 = vmatpush3.msra.mxu0 %v1569_v4 }
 0x9e3   : > { %2856 = vmatprep.subr.mxu0 %v3212_v1  ;;  %v1743_v7 = vpop.permute.xlu1 %1742  ;;  %v1745_v12 = vpop.permute.xlu0 %1744 }
 0x9e7   : > { %v1826_v16 = vpop.permute.xlu0 %1825 }
 0x9eb   : > { %v1822_v18 = vpop.permute.xlu0 %1821 }
 0xa1e   : > { %v1563_v62 = vpop.xlane.xlu1 %1562 }
 0xa1f   : > { %3035 = vrcp.f32 %v1563_v62 }
 0xa22   : > { %v1739_v63 = vpop.xlane.xlu1 %1738 }
 0xa23   : > { %3037 = vrcp.f32 %v1739_v63 }
 0xa26   : > { %v1824_v17 = vpop.permute.xlu1 %1823 }
 0xa2c   : > { %v3036_v0 = vpop.eup %3035 }
 0xa2d   : > { %v1565_v13 = vmul.f32 %v3036_v0, %v3032_v58 }
 0xa2f   : > { %2847 = vmatmul.mubr.msk.f32.vlgmr.msra.gmra.mxu0 %vm1156_vm3, %v1565_v13 }
 0xa30   : > { %v3038_v14 = vpop.eup %3037  ;;  %2857 = vmatpush3.msra.mxu0 %v1745_v12  ;;  %2860 = vmatprep.mubr.msk.f32.mxu0 %vm3213_vm0, %v3212_v1 }
 0xa31   : > { %2858 = vmatprep.subr.mxu0 %v3212_v1  ;;  %v1741_v15 = vmul.f32 %v3038_v14, %v3034_v60 }
 0xa32   : > { %2859 = vmatpush3.msra.mxu0 %v1743_v7 }
 0xa33   : > { %2863 = vmatprep.subr.mxu0 %v3212_v1  ;;  %2861 = vmatmul.mubr.msk.f32.vlgmr.msra.gmra.mxu0 %vm1156_vm3, %v1741_v15 }
 0xa34   : > { %2864 = vmatpush3.xpose.msk.msra.mxu0 %vm480_vm2, %v1826_v16  ;;  %2867 = vmatprep.mubr.msk.f32.mxu0 %vm3213_vm0, %v3212_v1  ;;  %v2186_v16 = vsub.s32 7, %v3452_v2 }
 0xa35   : > { %2865 = vmatprep.subr.mxu0 %v3212_v1 }
 0xa38   : > { %2866 = vmatpush3.xpose.msk.msra.mxu0 %vm480_vm2, %v1824_v17  ;;  %v2187_v17 = vrot.slane %v3469_v6, %v2186_v16  ;;  %v374_v6 = vld [vmem:[%s3915_s3 + $0x40] sm:$0xff] }
 0xa39   : > { %2884 = vmatprep.subr.mxu0 %v3212_v1 }
 0xa3b   : > { %2868 = vmatmul.mubr.msk.f32.vlgmr.msra.gmra.mxu0 %vm480_vm2, %v1822_v18 }
 0xa3c   : > { %2888 = vmatprep.mubr.msk.f32.mxu0 %vm3213_vm0, %v3212_v1 }
 0xaef   : > { %v3741_v3 = vpop.f32.mrf.mxu0 }
 0xaf1   : > { %v2848_v21 = vpop.f32.mrf.mxu0 }
 0xaf3   : > { %v1817_v41 = vpop.f32.mrf.mxu0 }
 0xaf5   : > { %v2862_v25 = vpop.f32.mrf.mxu0 }
 0xafb   : > { %v1899_v26 = vpop.f32.mrf.mxu0 }
 0xafc   : > { %v1903_v30 = vmul.f32 0.35355338, %v1899_v26 }
 0xafd   : > { %v2869_v31 = vpop.f32.mrf.mxu0 }
 0xafe   : > { %v1904_v32 = vadd.f32 %v3693_v35, %v1903_v30 }
 0xb00   : > { %v1905_v33 = vsel %vm1156_vm3, %v1904_v32, -inf }
 0xb01   : > { %1906 = vmax.xlane.f32.xlu1 %v1905_v33 }
 0xb12   : > { %1916 = vrot.lane.b32.xlu1 %v3704_v51, %s3217_s10 }
 0xb16   : > { %1999 = vrot.lane.b32.xlu1 %v3655_v22, %s3221_s11 }
 0xb1a   : > { %1995 = vrot.lane.b32.xlu1 %v3673_v27, %s3221_s11 }
 0xb8a   : > { %v1907_v34 = vpop.xlane.xlu1 %1906 }
 0xb8b   : > { %v1908_v36 = vsub.f32 %v1904_v32, %v1907_v34  ;;  %v377_v34 = vld [vmem:[%s3915_s3 + $0x58] sm:$0xff] }
 0xb8d   : > { %v1909_v37 = vmul.f32 1.442695, %v1908_v36  ;;  %v368_v36 = vld [vmem:[%s3915_s3 + $0x10] sm:$0xff] }
 0xb8e   : > { %v1917_v43 = vpop.permute.xlu1 %1916 }
 0xb8f   : > { %3039 = vpow2.f32 %v1909_v37  ;;  %v2385_v37 = vld [vmem:[%s3916_s4 + $0x38] sm:$0xff] }
 0xb92   : > { %v2000_v45 = vpop.permute.xlu1 %1999 }
 0xb96   : > { %v1996_v46 = vpop.permute.xlu1 %1995 }
 0xb9c   : > { %v3040_v38 = vpop.eup %3039 }
 0xb9d   : > { %v1911_v40 = vsel %vm1156_vm3, %v3040_v38, 0.0 }
 0xb9e   : > { %1912 = vadd.xlane.f32.xlu0 %v1911_v40  ;;  %v2383_v40 = vld [vmem:[%s3916_s4 + $0x28] sm:$0xff] }
 0xbb4   : > { %1918 = vrot.lane.b32.xlu0 %v3706_v52, %s3217_s10  ;;  %s3133_s10 = scalar_lea.vmem %s2504_s17, 128 }
 0xbb5   : > { %p3134_p9 = scmp.ne.s32.totalorder %s2504_s17, %s3133_s10 }
 0xbb7   : > { %p3135_p12 = pnand %p3134_p9, %p3944_p10 }
 0xbb8   : > { %1997 = vrot.lane.b32.xlu0 %v3661_v23, %s3221_s11 }
 0xbb9   : > { %p3136_p13 = pneg %p3135_p12 }
 0xc27   : > { %v1913_v42 = vpop.xlane.xlu0 %1912 }
 0xc28   : > { %3041 = vrcp.f32 %v1913_v42  ;;  %v2382_v42 = vld [vmem:[%s3916_s4 + $0x20] sm:$0xff] }
 0xc2b   : > { %v1919_v22 = vpop.permute.xlu0 %1918 }
 0xc2c   : > { %2871 = vmatpush3.msra.mxu1 %v1919_v22  ;;  %v2381_v22 = vld [vmem:[%s3916_s4 + $0x18] sm:$0xff] }
 0xc2d   : > { %2872 = vmatprep.subr.mxu1 %v3212_v1 }
 0xc2e   : > { %2873 = vmatpush3.msra.mxu1 %v1917_v43 }
 0xc2f   : > { %2877 = vmatprep.subr.mxu1 %v3212_v1  ;;  %v1998_v23 = vpop.permute.xlu0 %1997 }
 0xc35   : > { %v3042_v27 = vpop.eup %3041 }
 0xc36   : > { %v1915_v44 = vmul.f32 %v3042_v27, %v3040_v38  ;;  %v2384_v38 = vld [vmem:[%s3916_s4 + $0x30] sm:$0xff] }
 0xc38   : > { %2875 = vmatmul.mubr.msk.f32.vlgmr.msra.gmra.mxu1 %vm1156_vm3, %v1915_v44 }
 0xc39   : > { %2878 = vmatpush3.xpose.msk.msra.mxu1 %vm480_vm2, %v2000_v45  ;;  %2881 = vmatprep.mubr.msk.f32.mxu1 %vm3213_vm0, %v3212_v1  ;;  %v2290_v45 = vrot.slane %v3637_v9, %v1162_v5  ;;  %v2379_v5 = vld [vmem:[%s3916_s4 + $0x8] sm:$0xff] }
 0xc3a   : > { %2879 = vmatprep.subr.mxu1 %v3212_v1 }
 0xc3d   : > { %2880 = vmatpush3.xpose.msk.msra.mxu1 %vm480_vm2, %v1998_v23 }
 0xc3e   : > { %2902 = vmatprep.subr.mxu1 %v3212_v1 }
 0xc40   : > { %2882 = vmatmul.mubr.msk.f32.vlgmr.msra.gmra.mxu1 %vm480_vm2, %v1996_v46  ;;  %v2295_v46 = vrot.slane %v3637_v9, %v1280_v24  ;;  %v2378_v24 = vld [vmem:[%s3916_s4] sm:$0xff] }
 0xc41   : > { %2910 = vmatprep.mubr.msk.f32.mxu1 %vm3213_vm0, %v3212_v1  ;;  %2903 = vmatpush3.msra.mxu1 %v377_v34 }
 0xc42   : > { %2904 = vmatprep.subr.mxu1 %v3212_v1 }
 0xc43   : > { %2905 = vmatpush3.msra.mxu1 %v374_v6 }
 0xc44   : > { %2906 = vmatprep.subr.mxu1 %v3212_v1 }
 0xcf8   : > { %v1991_v48 = vpop.f32.mrf.mxu1 }
 0xcfa   : > { %v2876_v49 = vpop.f32.mrf.mxu1 }
 0xd00   : > { %v2073_v50 = vpop.f32.mrf.mxu1 }
 0xd01   : > { %v2077_v53 = vmul.f32 0.35355338, %v2073_v50 }
 0xd02   : > { %v2883_v54 = vpop.f32.mrf.mxu1 }
 0xd03   : > { %v2078_v55 = vadd.f32 %v3693_v35, %v2077_v53  ;;  %v2380_v53 = vld [vmem:[%s3916_s4 + $0x10] sm:$0xff]  ;;  %v2663_v54 = vld [vmem:[%s3918_s6] ss:$0 sm:$0xff] }
 0xd05   : > { %v2079_v56 = vsel %vm1156_vm3, %v2078_v55, -inf }
 0xd06   : > { %2080 = vmax.xlane.f32.xlu0 %v2079_v56 }
 0xd1c   : > { %2092 = vrot.lane.b32.xlu0 %v3706_v52, %s3219_s30 }
 0xd20   : > { %2194 = vrot.lane.b32.xlu0 %v3552_v8, %s3214_s20 }
 0xd24   : > { %2170 = vrot.lane.b32.xlu0 %v1817_v41, %s3226_s14 }
 0xd28   : > { %2174 = vrot.lane.b32.xlu0 %v1991_v48, %s3227_s29 }
 0xd2c   : > { %2188 = vrot.lane.b32.xlu0 %v3594_v39, %s3214_s20 }
 0xd8f   : > { %v2081_v57 = vpop.xlane.xlu0 %2080 }
 0xd90   : > { %v2082_v58 = vsub.f32 %v2078_v55, %v2081_v57 }
 0xd92   : > { %v2083_v59 = vmul.f32 1.442695, %v2082_v58 }
 0xd93   : > { %v2093_v35 = vpop.permute.xlu0 %2092 }
 0xd94   : > { %3043 = vpow2.f32 %v2083_v59  ;;  %2885 = vmatpush3.msra.mxu0 %v2093_v35  ;;  %v2389_v59 = vrot.slane %v3637_v9, %v456_v11 }
 0xd95   : > { %2886 = vmatprep.subr.mxu0 %v3212_v1 }
 0xd97   : > { %v2195_v4 = vpop.permute.xlu0 %2194 }
 0xda1   : > { %v3044_v60 = vpop.eup %3043 }
 0xda2   : > { %v2085_v52 = vsel %vm1156_vm3, %v3044_v60, 0.0 }
 0xda3   : > { %2086 = vadd.xlane.f32.xlu1 %v2085_v52 }
 0xdb4   : > { %2090 = vrot.lane.b32.xlu1 %v3704_v51, %s3219_s30  ;;  %v2171_v51 = vpop.permute.xlu0 %2170  ;;  %s3229_s30 = smov [#allocation8]  }
 0xdb5   : > { %v2181_v12 = vsel %vm480_vm2, %v3741_v3, %v2171_v51  ;;  %s3137_s28 = sshll.u32 %s3229_s30, 4  ;;  %s3138_s28 = int_to_ptr.vmem [resolvable:$false] %s3137_s28 }
 0xdb6   : > { %s3139_s18 = scalar_lea.vmem %s3138_s28, 256  ;;  %p3140_p0 = scmp.lt.s32.totalorder %s2504_s17, %s3138_s28 }
 0xdb7   : > { %p3141_p5 = scmp.lt.s32.totalorder %s3139_s18, %s3133_s10 }
 0xdb8   : > { %2192 = vrot.lane.b32.xlu1 %v3575_v28, %s3214_s20  ;;  %v2175_v7 = vpop.permute.xlu0 %2174 }
 0xdb9   : > { %v2182_v13 = vsel %vm1156_vm3, %v2181_v12, %v2175_v7  ;;  %v2481_v7 = vrot.slane %v3637_v9, %v1454_v20  ;;  %p3142_p2 = por %p3141_p5, %p3140_p0 }
 0xdbb   : > { %p3143_p1 = pnand %p3142_p2, %p3136_p13 }
 0xdbc   : > { %2190 = vrot.lane.b32.xlu1 %v3582_v29, %s3214_s20  ;;  %v2189_v62 = vpop.permute.xlu0 %2188 }
 0xe2c   : > { %v2087_v8 = vpop.xlane.xlu1 %2086 }
 0xe2d   : > { %3045 = vrcp.f32 %v2087_v8 }
 0xe30   : > { %v2091_v39 = vpop.permute.xlu1 %2090 }
 0xe31   : > { %2887 = vmatpush3.msra.mxu0 %v2091_v39 }
 0xe32   : > { %2891 = vmatprep.subr.mxu0 %v3212_v1 }
 0xe34   : > { %v2193_v28 = vpop.permute.xlu1 %2192 }
 0xe38   : > { %v2191_v29 = vpop.permute.xlu1 %2190 }
 0xe3a   : > { %v3046_v61 = vpop.eup %3045 }
 0xe3b   : > { %v2089_v10 = vmul.f32 %v3046_v61, %v3044_v60 }
 0xe3d   : > { %2889 = vmatmul.mubr.msk.f32.vlgmr.msra.gmra.mxu0 %vm1156_vm3, %v2089_v10 }
 0xe3e   : > { %2892 = vmatpush3.msra.mxu0 %v2195_v4  ;;  %2899 = vmatprep.mubr.msk.f32.mxu0 %vm3213_vm0, %v3212_v1 }
 0xe3f   : > { %2893 = vmatprep.subr.mxu0 %v3212_v1 }
 0xe40   : > { %2894 = vmatpush3.msra.mxu0 %v2193_v28 }
 0xe41   : > { %2895 = vmatprep.subr.mxu0 %v3212_v1 }
 0xe42   : > { %2896 = vmatpush3.msra.mxu0 %v2191_v29 }
 0xe43   : > { %2897 = vmatprep.subr.mxu0 %v3212_v1 }
 0xe44   : > { %2898 = vmatpush3.msra.mxu0 %v2189_v62 }
 0xe45   : > { %2913 = vmatprep.subr.mxu0 %v3212_v1 }
 0xefd   : > { %v2165_v63 = vpop.f32.mrf.mxu0 }
 0xefe   : > { %2178 = vrot.lane.b32.xlu1 %v2165_v63, %s3228_s16  ;;  %v2486_v63 = vrot.slane %v3637_v9, %v1460_v47 }
 0xeff   : > { %v2890_v0 = vpop.f32.mrf.mxu0 }
 0xf70   : > { %v2179_v14 = vpop.permute.xlu1 %2178 }
 0xf71   : > { %v2183_v15 = vsel %vm1158_vm4, %v2182_v13, %v2179_v14 }
 0xf72   : > { %2900 = vmatmul.mubr.msk.f32.vlgmr.msra.gmra.mxu0 %vm380_vm1, %v2183_v15 }
 0xf73   : > { %2929 = vmatprep.mubr.msk.f32.mxu0 %vm3213_vm0, %v3212_v1  ;;  %2914 = vmatpush3.msra.mxu0 %v2385_v37 }
 0xf74   : > { %2915 = vmatprep.subr.mxu0 %v3212_v1 }
 0xf75   : > { %2916 = vmatpush3.msra.mxu0 %v2384_v38 }
 0xf76   : > { %2917 = vmatprep.subr.mxu0 %v3212_v1 }
 0xf77   : > { %2918 = vmatpush3.msra.mxu0 %v2383_v40 }
 0xf78   : > { %2919 = vmatprep.subr.mxu0 %v3212_v1 }
 0xf79   : > { %2920 = vmatpush3.msra.mxu0 %v2382_v42 }
 0xf7a   : > { %2921 = vmatprep.subr.mxu0 %v3212_v1 }
 0xf7b   : > { %2922 = vmatpush3.msra.mxu0 %v2381_v22 }
 0xf7c   : > { %2923 = vmatprep.subr.mxu0 %v3212_v1 }
 0xf7d   : > { %2924 = vmatpush3.msra.mxu0 %v2380_v53 }
 0xf7e   : > { %2925 = vmatprep.subr.mxu0 %v3212_v1 }
 0xf7f   : > { %2926 = vmatpush3.msra.mxu0 %v2379_v5 }
 0xf80   : > { %2927 = vmatprep.subr.mxu0 %v3212_v1 }
 0xf81   : > { %2928 = vmatpush3.msra.mxu0 %v2378_v24 }
0x1032   : > { %v2269_v18 = vpop.f32.mrf.mxu0 }
0x1033   : > { %v2270_v21 = vadd.f32 %v2269_v18, %v2187_v17 }
0x1034   : > { %v2901_v41 = vpop.f32.mrf.mxu0 }
0x1035   : > { %v2273_v25 = vadd.f32 %v2270_v21, %v3645_v19  ;;  %v371_v19 = vld [vmem:[%s3915_s3 + $0x28] sm:$0xff] }
0x1036   : > { %2907 = vmatpush3.msra.mxu1 %v371_v19 }
0x1037   : > { %v2274_v3 = vsel %vm380_vm1, %v2273_v25, 0.0  ;;  %2908 = vmatprep.subr.mxu1 %v3212_v1 }
0x1038   : > { %2275 = vadd.xlane.f32.xlu1 %v2274_v3  ;;  %2909 = vmatpush3.msra.mxu1 %v368_v36 }
0x10c1   : > { %v2276_v26 = vpop.xlane.xlu1 %2275 }
0x10c2   : > { %v2277_v30 = vmul.f32 0.03125, %v2276_v26 }
0x10c4   : > { %v2278_v31 = vsub.f32 %v2273_v25, %v2277_v30 }
0x10c6   : > { %v2279_v32 = vmul.f32 %v2278_v31, %v2278_v31 }
0x10c8   : > { %v2280_v33 = vsel %vm380_vm1, %v2279_v32, 0.0 }
0x10c9   : > { %2281 = vadd.xlane.f32.xlu0 %v2280_v33 }
0x1152   : > { %v2282_v43 = vpop.xlane.xlu0 %2281 }
0x1153   : > { %v2283_v27 = vmul.f32 0.03125, %v2282_v43 }
0x1155   : > { %v2284_v44 = vadd.f32 1e-05, %v2283_v27 }
0x1157   : > { %3047 = vrsqrt.f32 %v2284_v44 }
0x1164   : > { %v3048_v23 = vpop.eup %3047 }
0x1165   : > { %v2286_v48 = vmul.f32 %v3048_v23, %v2278_v31 }
0x1167   : > { %v2291_v49 = vmul.f32 %v2290_v45, %v2286_v48 }
0x1169   : > { %v2296_v50 = vadd.f32 %v2295_v46, %v2291_v49 }
0x116b   : > { %2911 = vmatmul.mubr.msk.f32.vlgmr.msra.gmra.mxu1 %vm380_vm1, %v2296_v50 }
0x122b   : > { %v2373_v55 = vpop.f32.mrf.mxu1 }
0x122c   : > { %v2374_v56 = vadd.f32 %v2663_v54, %v2373_v55 }
0x122d   : > { %v2912_v57 = vpop.f32.mrf.mxu1 }
0x122e   : > { %v2377_v58 = vmax.f32 %v2374_v56, 0.0 }
0x1230   : > { %2930 = vmatmul.mubr.msk.f32.vlgmr.msra.gmra.mxu0 %vm2390_vm5, %v2377_v58 }
0x12f0   : > { %v2460_v1 = vpop.f32.mrf.mxu0 }
0x12f1   : > { %v2461_v35 = vadd.f32 %v2460_v1, %v2389_v59 }
0x12f2   : > { %v2931_v60 = vpop.f32.mrf.mxu0 }
0x12f3   : > { %v2464_v52 = vadd.f32 %v2461_v35, %v2296_v50 }
0x12f5   : > { %v2465_v8 = vsel %vm380_vm1, %v2464_v52, 0.0 }
0x12f6   : > { %2466 = vadd.xlane.f32.xlu0 %v2465_v8 }
0x137f   : > { %v2467_v39 = vpop.xlane.xlu0 %2466 }
0x1380   : > { %v2468_v61 = vmul.f32 0.03125, %v2467_v39 }
0x1382   : > { %v2469_v10 = vsub.f32 %v2464_v52, %v2468_v61 }
0x1384   : > { %v2470_v4 = vmul.f32 %v2469_v10, %v2469_v10 }
0x1386   : > { %v2471_v28 = vsel %vm380_vm1, %v2470_v4, 0.0 }
0x1387   : > { %2472 = vadd.xlane.f32.xlu1 %v2471_v28 }
0x1410   : > { %v2473_v29 = vpop.xlane.xlu1 %2472 }
0x1411   : > { %v2474_v51 = vmul.f32 0.03125, %v2473_v29 }
0x1413   : > { %v2475_v11 = vadd.f32 1e-05, %v2474_v51 }
0x1415   : > { %3049 = vrsqrt.f32 %v2475_v11 }
0x1422   : > { %v3050_v62 = vpop.eup %3049 }
0x1423   : > { %v2477_v0 = vmul.f32 %v3050_v62, %v2469_v10 }
0x1425   : > { %v2482_v12 = vmul.f32 %v2481_v7, %v2477_v0 }
0x1427   : > { %v2487_v13 = vadd.f32 %v2486_v63, %v2482_v12 }
0x1429   : > { %2488 = vst.msk [vmem:[%s358_s5] sm:$0xff] %vm380_vm1, %v2487_v13 }
0x142a   : > { %3146 = shalt.err (!%p3143_p1)
}
0x142b   : > { %s3147_s11 = scalar_lea.hbm %s2501_s19, 128  ;;  %s3151_s29 = scalar_lea.hbm %s3919_s7, 256 }
0x142c   : > { %p3148_p4 = scmp.ne.s32.totalorder %s2501_s19, %s3147_s11  ;;  %p3152_p11 = scmp.lt.s32.totalorder %s2501_s19, %s3919_s7 }
0x142d   : > { %p3153_p8 = scmp.lt.s32.totalorder %s3151_s29, %s3147_s11 }
0x142e   : > { %p3149_p7 = pnand %p3148_p4, %p3944_p10 }
0x142f   : > { %p3154_p3 = por %p3153_p8, %p3152_p11 }
0x1430   : > { %p3150_p6 = pneg %p3149_p7 }
0x1432   : > { %p3155_p9 = pnand %p3154_p3, %p3150_p6 }
0x1434   : > { %3158 = shalt.err (!%p3155_p9)
}
0x1435   : > { %2940 = dma.vmem_to_hbm [thread:$0]  (%p3944_p10), %s2504_s17, 128, %s2501_s19, %s2490_s9  }
0x1436 PF: > { %s2515_s21 = sand.u32 1, %s3193_s24   ;;  %p3945_p12 = scmp.ne.s32.totalorder %s3929_s8, 0 }
0x1437   : > { %p3946_p13 = scmp.ge.s32.totalorder %s3205_s27, 2  ;;  %s2516_s5 = scalar_lea.sflag [#allocation4], %s2515_s21 }
0x1439   : > { %p2954_p0 = pnand %p3946_p13, %p3945_p12 }
0x143b   : > { %p2955_p5 = pneg %p2954_p0 }
0x143d   : > { %3188 = dma.done.wait (%p2955_p5), %s2516_s5, 128  }
0x143e   : > { %3190 = vsyncadd (%p2955_p5), %s2516_s5, 4294967168  ;;  %s3947_s16 = sld [smem:[#allocation13_spill]]  ;;  %p23_p2 = scmp.ge.s32.totalorder %s3324_s13, 4  }
0x143f   : > { %s3948_s24 = smov %s3197_s25  ;;  %s3949_s25 = smov %s3201_s26 }
0x1440   : > { %s3951_s27 = smov %s3324_s13  ;;  %25 = sbr.rel (!%p23_p2) target bundleno = 9 (0x9), region = 113 }
0x1444   : > { %s3950_s26 = smov %s3947_s16 }
0x1445   :  { %2521 = vsyncpa [#allocation3], 1 }
0x1446   :  { %2523 = vsyncpa [#allocation3 + $0x1], 1 }
0x1447   :  { %2524 = vsyncpa [#allocation6], 1 }
0x1448   :  { %2526 = vsyncpa [#allocation6 + $0x1], 1 }
0x1449   :  { %2527 = vsyncpa [#allocation4], 1 }
0x144a   :  { %2529 = vsyncpa [#allocation4 + $0x1], 1 }

</bundles_post_ra>
